<compile_context>
chip_gen: v6e
topology: v6e:2x2x1
jax: 0.10.0
libtpu: 0.0.40
codegen_flags: <defaults>
</compile_context>

<pallas_src>
import jax
import jax.numpy as jnp
from jax.experimental import pallas as pl
from jax.experimental.pallas import tpu as pltpu


# ---------------------------------------------------------------------------
# Fused kernel: conv(3x3, pad=1) + bias + ReLU + Linear + elu(x)+1
# One grid step == one batch element.
# ---------------------------------------------------------------------------
def _make_encoder_kernel(H, W, C_in, C_out, KH, KW, U):
    WC_in = W * C_in
    WC_out = W * C_out

    def kernel(xp_ref, bw_ref, cb_ref, rw_ref, rb_ref, o_ref):
        # xp_ref: (1, H+KH-1, (W+KW-1)*C_in)   padded image, 2-D per batch elem
        # bw_ref: (KH*KW, W*C_in, W*C_out)     block-diagonal conv weights
        # cb_ref: (1, W*C_out)                 conv bias tiled along lanes
        # rw_ref: (H, W*C_out, U)              readout weights, per output row
        # rb_ref: (1, U)
        # o_ref : (1, 1, U)
        x = xp_ref[0]                                   # (H+KH-1, (W+KW-1)*C_in)

        # ---- core: conv as 9 shifted, accumulating MXU matmuls (all in VMEM)
        acc = jnp.zeros((H, WC_out), dtype=jnp.float32)
        for kh in range(KH):
            for kw in range(KW):
                tap = x[kh:kh + H, kw * C_in: kw * C_in + WC_in]   # (H, W*C_in)
                acc = acc + jnp.dot(tap, bw_ref[kh * KW + kw],
                                    preferred_element_type=jnp.float32)
        feat = jnp.maximum(acc + cb_ref[...], 0.0)       # (H, W*C_out) lane-dense

        # ---- readout: Linear over the flattened features, row by row
        y = rb_ref[...]                                  # (1, U)
        for h in range(H):
            y = y + jnp.dot(feat[h:h + 1, :], rw_ref[h],
                            preferred_element_type=jnp.float32)

        # ---- epilogue: elu(y) + 1  ==  y + 1 (y > 0) else exp(y)   (EUP slot)
        o_ref[0] = jnp.where(y > 0.0, y + 1.0, jnp.exp(y)).astype(o_ref.dtype)

    return kernel


# ---------------------------------------------------------------------------
# Encoder forward: host-side layout prep (no compute) + one fused pallas_call
# ---------------------------------------------------------------------------
def encoder_forward(x_nchw, params):
    conv_w, conv_b, ro_w, ro_b = params          # HWIO conv weights
    N, C_in, H, W = x_nchw.shape
    KH, KW, _, C_out = conv_w.shape
    U = ro_w.shape[1]
    ph, pw = KH // 2, KW // 2

    # --- data / weight layout prep (pure re-layout, tiny, stays in XLA) ------
    x = jnp.transpose(x_nchw, (0, 2, 3, 1))                        # NHWC
    xp = jnp.pad(x, ((0, 0), (ph, KH - 1 - ph), (pw, KW - 1 - pw), (0, 0)))
    xp2 = xp.reshape(N, H + KH - 1, (W + KW - 1) * C_in)           # 2-D per batch

    # block-diagonal conv weights: big_w[k, w*C_in+i, v*C_out+o] = (w==v)*W[k,i,o]
    cw = conv_w.reshape(KH * KW, C_in, C_out)
    big_w = jnp.einsum('wv,kio->kwivo', jnp.eye(W, dtype=conv_w.dtype), cw)
    big_w = big_w.reshape(KH * KW, W * C_in, W * C_out)

    cb_row = jnp.tile(conv_b, (W,)).reshape(1, W * C_out)

    # readout weights in PyTorch NCHW-flatten order -> per-output-row layout
    rw3 = ro_w.reshape(C_out, H, W, U).transpose(1, 2, 0, 3).reshape(H, W * C_out, U)
    rb = ro_b.reshape(1, U)

    kernel = _make_encoder_kernel(H, W, C_in, C_out, KH, KW, U)

    flops = 2 * N * KH * KW * H * (W * C_in) * (W * C_out) + 2 * N * H * (W * C_out) * U
    bytes_accessed = 4 * (N * (H + KH - 1) * (W + KW - 1) * C_in
                          + KH * KW * (W * C_in) * (W * C_out)
                          + W * C_out + H * (W * C_out) * U + U + N * U)

    out = pl.pallas_call(
        kernel,
        out_shape=jax.ShapeDtypeStruct((N, 1, U), jnp.float32),
        grid=(N,),
        in_specs=[
            pl.BlockSpec((1, H + KH - 1, (W + KW - 1) * C_in), lambda b: (b, 0, 0)),
            pl.BlockSpec((KH * KW, W * C_in, W * C_out), lambda b: (0, 0, 0)),
            pl.BlockSpec((1, W * C_out), lambda b: (0, 0)),
            pl.BlockSpec((H, W * C_out, U), lambda b: (0, 0, 0)),
            pl.BlockSpec((1, U), lambda b: (0, 0)),
        ],
        out_specs=pl.BlockSpec((1, 1, U), lambda b: (b, 0, 0)),
        compiler_params=pltpu.CompilerParams(
            dimension_semantics=("parallel",)),
        cost_estimate=pl.CostEstimate(
            flops=flops, transcendentals=N * U, bytes_accessed=bytes_accessed),
    )(xp2, big_w, cb_row, rw3, rb)

    return out.reshape(N, U)


# ---------------------------------------------------------------------------
# Pure-JAX reference (PyTorch semantics: NCHW flatten before the Linear)
# ---------------------------------------------------------------------------
def encoder_reference(x_nchw, params):
    conv_w, conv_b, ro_w, ro_b = params
    N, C_in, H, W = x_nchw.shape
    x = jnp.transpose(x_nchw, (0, 2, 3, 1))
    y = jax.lax.conv_general_dilated(
        x, conv_w, window_strides=(1, 1), padding="SAME",
        dimension_numbers=("NHWC", "HWIO", "NHWC"),
    ) + conv_b
    y = jnp.maximum(y, 0.0)
    feat = jnp.transpose(y, (0, 3, 1, 2)).reshape(N, -1)   # NCHW (PyTorch) flatten
    z = feat @ ro_w + ro_b
    return jnp.where(z > 0, z, jnp.exp(z) - 1.0) + 1.0


if __name__ == "__main__":
    # Small shapes consistent with the module: batch=2, C_in=4, spatial=16x16
    N, C_in, H, W = 2, 4, 16, 16
    C_out, n_neurons = 8, 32

    key = jax.random.PRNGKey(0)
    k_x, k_cw, k_cb, k_rw, k_rb = jax.random.split(key, 5)

    x = jax.random.normal(k_x, (N, C_in, H, W), dtype=jnp.float32)

    conv_w = jax.random.normal(k_cw, (3, 3, C_in, C_out), dtype=jnp.float32) * 0.1
    conv_b = jax.random.normal(k_cb, (C_out,), dtype=jnp.float32) * 0.1
    ro_w = jax.random.normal(k_rw, (C_out * H * W, n_neurons), dtype=jnp.float32) * 0.02
    ro_b = jax.random.normal(k_rb, (n_neurons,), dtype=jnp.float32) * 0.1
    params = (conv_w, conv_b, ro_w, ro_b)

    fwd = jax.jit(encoder_forward)
    out = jax.block_until_ready(fwd(x, params))
    ref = jax.block_until_ready(encoder_reference(x, params))

    assert out.shape == (N, n_neurons), out.shape
    assert jnp.allclose(out, ref, atol=1e-4, rtol=1e-4), float(jnp.max(jnp.abs(out - ref)))

    print("KERNEL_OK")
</pallas_src>

<mosaic_0001>
module attributes {stable_mosaic.version = 11 : i64} {
  func.func @kernel(%arg0: i32, %arg1: memref<1x18x72xf32, #tpu.memory_space<vmem>>, %arg2: memref<9x64x128xf32, #tpu.memory_space<vmem>>, %arg3: memref<1x128xf32, #tpu.memory_space<vmem>>, %arg4: memref<16x128x32xf32, #tpu.memory_space<vmem>>, %arg5: memref<1x32xf32, #tpu.memory_space<vmem>>, %arg6: memref<1x1x32xf32, #tpu.memory_space<vmem>>) attributes {dimension_semantics = [#tpu.dimension_semantics<parallel>], iteration_bounds = array<i64: 2>, scalar_prefetch = 0 : i64, scratch_operands = 0 : i64, tpu.core_type = #tpu.core_type<tc>, window_params = [{transform_indices = @transform_0, window_bounds = array<i64: 1, 18, 72>}, {pipeline_mode = #tpu.pipeline_mode<synchronous>, transform_indices = @transform_1, window_bounds = array<i64: 9, 64, 128>}, {pipeline_mode = #tpu.pipeline_mode<synchronous>, transform_indices = @transform_2, window_bounds = array<i64: 1, 128>}, {pipeline_mode = #tpu.pipeline_mode<synchronous>, transform_indices = @transform_3, window_bounds = array<i64: 16, 128, 32>}, {pipeline_mode = #tpu.pipeline_mode<synchronous>, transform_indices = @transform_4, window_bounds = array<i64: 1, 32>}, {transform_indices = @transform_5, window_bounds = array<i64: 1, 1, 32>}]} {
    %c0 = arith.constant 0 : index
    %c0_0 = arith.constant 0 : index
    %c0_1 = arith.constant 0 : index
    %0 = vector.load %arg1[%c0, %c0_0, %c0_1] : memref<1x18x72xf32, #tpu.memory_space<vmem>>, vector<1x18x72xf32>
    %1 = vector.shape_cast %0 : vector<1x18x72xf32> to vector<18x72xf32>
    %cst = arith.constant 0.000000e+00 : f32
    %2 = vector.broadcast %cst : f32 to vector<16x128xf32>
    %3 = vector.extract_strided_slice %1 {offsets = [0, 0], sizes = [16, 64], strides = [1, 1]} : vector<18x72xf32> to vector<16x64xf32>
    %c0_2 = arith.constant 0 : index
    %c0_3 = arith.constant 0 : index
    %c0_4 = arith.constant 0 : index
    %4 = vector.load %arg2[%c0_2, %c0_3, %c0_4] : memref<9x64x128xf32, #tpu.memory_space<vmem>>, vector<1x64x128xf32>
    %5 = vector.shape_cast %4 : vector<1x64x128xf32> to vector<64x128xf32>
    %cst_5 = arith.constant dense<0.000000e+00> : vector<16x128xf32>
    %6 = tpu.matmul %3, %5, %cst_5 {dimension_numbers = #tpu.dot_dimension_numbers<[1], [0], [0], [1], [0, 0, 1, 1], [], []>} : vector<16x64xf32>, vector<64x128xf32>, vector<16x128xf32> -> vector<16x128xf32>
    %7 = arith.addf %2, %6 : vector<16x128xf32>
    %8 = vector.extract_strided_slice %1 {offsets = [0, 4], sizes = [16, 64], strides = [1, 1]} : vector<18x72xf32> to vector<16x64xf32>
    %c1 = arith.constant 1 : index
    %c0_6 = arith.constant 0 : index
    %c0_7 = arith.constant 0 : index
    %9 = vector.load %arg2[%c1, %c0_6, %c0_7] : memref<9x64x128xf32, #tpu.memory_space<vmem>>, vector<1x64x128xf32>
    %10 = vector.shape_cast %9 : vector<1x64x128xf32> to vector<64x128xf32>
    %cst_8 = arith.constant dense<0.000000e+00> : vector<16x128xf32>
    %11 = tpu.matmul %8, %10, %cst_8 {dimension_numbers = #tpu.dot_dimension_numbers<[1], [0], [0], [1], [0, 0, 1, 1], [], []>} : vector<16x64xf32>, vector<64x128xf32>, vector<16x128xf32> -> vector<16x128xf32>
    %12 = arith.addf %7, %11 : vector<16x128xf32>
    %13 = vector.extract_strided_slice %1 {offsets = [0, 8], sizes = [16, 64], strides = [1, 1]} : vector<18x72xf32> to vector<16x64xf32>
    %c2 = arith.constant 2 : index
    %c0_9 = arith.constant 0 : index
    %c0_10 = arith.constant 0 : index
    %14 = vector.load %arg2[%c2, %c0_9, %c0_10] : memref<9x64x128xf32, #tpu.memory_space<vmem>>, vector<1x64x128xf32>
    %15 = vector.shape_cast %14 : vector<1x64x128xf32> to vector<64x128xf32>
    %cst_11 = arith.constant dense<0.000000e+00> : vector<16x128xf32>
    %16 = tpu.matmul %13, %15, %cst_11 {dimension_numbers = #tpu.dot_dimension_numbers<[1], [0], [0], [1], [0, 0, 1, 1], [], []>} : vector<16x64xf32>, vector<64x128xf32>, vector<16x128xf32> -> vector<16x128xf32>
    %17 = arith.addf %12, %16 : vector<16x128xf32>
    %18 = vector.extract_strided_slice %1 {offsets = [1, 0], sizes = [16, 64], strides = [1, 1]} : vector<18x72xf32> to vector<16x64xf32>
    %c3 = arith.constant 3 : index
    %c0_12 = arith.constant 0 : index
    %c0_13 = arith.constant 0 : index
    %19 = vector.load %arg2[%c3, %c0_12, %c0_13] : memref<9x64x128xf32, #tpu.memory_space<vmem>>, vector<1x64x128xf32>
    %20 = vector.shape_cast %19 : vector<1x64x128xf32> to vector<64x128xf32>
    %cst_14 = arith.constant dense<0.000000e+00> : vector<16x128xf32>
    %21 = tpu.matmul %18, %20, %cst_14 {dimension_numbers = #tpu.dot_dimension_numbers<[1], [0], [0], [1], [0, 0, 1, 1], [], []>} : vector<16x64xf32>, vector<64x128xf32>, vector<16x128xf32> -> vector<16x128xf32>
    %22 = arith.addf %17, %21 : vector<16x128xf32>
    %23 = vector.extract_strided_slice %1 {offsets = [1, 4], sizes = [16, 64], strides = [1, 1]} : vector<18x72xf32> to vector<16x64xf32>
    %c4 = arith.constant 4 : index
    %c0_15 = arith.constant 0 : index
    %c0_16 = arith.constant 0 : index
    %24 = vector.load %arg2[%c4, %c0_15, %c0_16] : memref<9x64x128xf32, #tpu.memory_space<vmem>>, vector<1x64x128xf32>
    %25 = vector.shape_cast %24 : vector<1x64x128xf32> to vector<64x128xf32>
    %cst_17 = arith.constant dense<0.000000e+00> : vector<16x128xf32>
    %26 = tpu.matmul %23, %25, %cst_17 {dimension_numbers = #tpu.dot_dimension_numbers<[1], [0], [0], [1], [0, 0, 1, 1], [], []>} : vector<16x64xf32>, vector<64x128xf32>, vector<16x128xf32> -> vector<16x128xf32>
    %27 = arith.addf %22, %26 : vector<16x128xf32>
    %28 = vector.extract_strided_slice %1 {offsets = [1, 8], sizes = [16, 64], strides = [1, 1]} : vector<18x72xf32> to vector<16x64xf32>
    %c5 = arith.constant 5 : index
    %c0_18 = arith.constant 0 : index
    %c0_19 = arith.constant 0 : index
    %29 = vector.load %arg2[%c5, %c0_18, %c0_19] : memref<9x64x128xf32, #tpu.memory_space<vmem>>, vector<1x64x128xf32>
    %30 = vector.shape_cast %29 : vector<1x64x128xf32> to vector<64x128xf32>
    %cst_20 = arith.constant dense<0.000000e+00> : vector<16x128xf32>
    %31 = tpu.matmul %28, %30, %cst_20 {dimension_numbers = #tpu.dot_dimension_numbers<[1], [0], [0], [1], [0, 0, 1, 1], [], []>} : vector<16x64xf32>, vector<64x128xf32>, vector<16x128xf32> -> vector<16x128xf32>
    %32 = arith.addf %27, %31 : vector<16x128xf32>
    %33 = vector.extract_strided_slice %1 {offsets = [2, 0], sizes = [16, 64], strides = [1, 1]} : vector<18x72xf32> to vector<16x64xf32>
    %c6 = arith.constant 6 : index
    %c0_21 = arith.constant 0 : index
    %c0_22 = arith.constant 0 : index
    %34 = vector.load %arg2[%c6, %c0_21, %c0_22] : memref<9x64x128xf32, #tpu.memory_space<vmem>>, vector<1x64x128xf32>
    %35 = vector.shape_cast %34 : vector<1x64x128xf32> to vector<64x128xf32>
    %cst_23 = arith.constant dense<0.000000e+00> : vector<16x128xf32>
    %36 = tpu.matmul %33, %35, %cst_23 {dimension_numbers = #tpu.dot_dimension_numbers<[1], [0], [0], [1], [0, 0, 1, 1], [], []>} : vector<16x64xf32>, vector<64x128xf32>, vector<16x128xf32> -> vector<16x128xf32>
    %37 = arith.addf %32, %36 : vector<16x128xf32>
    %38 = vector.extract_strided_slice %1 {offsets = [2, 4], sizes = [16, 64], strides = [1, 1]} : vector<18x72xf32> to vector<16x64xf32>
    %c7 = arith.constant 7 : index
    %c0_24 = arith.constant 0 : index
    %c0_25 = arith.constant 0 : index
    %39 = vector.load %arg2[%c7, %c0_24, %c0_25] : memref<9x64x128xf32, #tpu.memory_space<vmem>>, vector<1x64x128xf32>
    %40 = vector.shape_cast %39 : vector<1x64x128xf32> to vector<64x128xf32>
    %cst_26 = arith.constant dense<0.000000e+00> : vector<16x128xf32>
    %41 = tpu.matmul %38, %40, %cst_26 {dimension_numbers = #tpu.dot_dimension_numbers<[1], [0], [0], [1], [0, 0, 1, 1], [], []>} : vector<16x64xf32>, vector<64x128xf32>, vector<16x128xf32> -> vector<16x128xf32>
    %42 = arith.addf %37, %41 : vector<16x128xf32>
    %43 = vector.extract_strided_slice %1 {offsets = [2, 8], sizes = [16, 64], strides = [1, 1]} : vector<18x72xf32> to vector<16x64xf32>
    %c8 = arith.constant 8 : index
    %c0_27 = arith.constant 0 : index
    %c0_28 = arith.constant 0 : index
    %44 = vector.load %arg2[%c8, %c0_27, %c0_28] : memref<9x64x128xf32, #tpu.memory_space<vmem>>, vector<1x64x128xf32>
    %45 = vector.shape_cast %44 : vector<1x64x128xf32> to vector<64x128xf32>
    %cst_29 = arith.constant dense<0.000000e+00> : vector<16x128xf32>
    %46 = tpu.matmul %43, %45, %cst_29 {dimension_numbers = #tpu.dot_dimension_numbers<[1], [0], [0], [1], [0, 0, 1, 1], [], []>} : vector<16x64xf32>, vector<64x128xf32>, vector<16x128xf32> -> vector<16x128xf32>
    %47 = arith.addf %42, %46 : vector<16x128xf32>
    %c0_30 = arith.constant 0 : index
    %c0_31 = arith.constant 0 : index
    %48 = vector.load %arg3[%c0_30, %c0_31] : memref<1x128xf32, #tpu.memory_space<vmem>>, vector<1x128xf32>
    %49 = vector.broadcast %48 : vector<1x128xf32> to vector<16x128xf32>
    %50 = arith.addf %47, %49 : vector<16x128xf32>
    %cst_32 = arith.constant 0.000000e+00 : f32
    %51 = vector.broadcast %cst_32 : f32 to vector<16x128xf32>
    %52 = arith.maximumf %50, %51 : vector<16x128xf32>
    %c0_33 = arith.constant 0 : index
    %c0_34 = arith.constant 0 : index
    %53 = vector.load %arg5[%c0_33, %c0_34] : memref<1x32xf32, #tpu.memory_space<vmem>>, vector<1x32xf32>
    %54 = vector.extract_strided_slice %52 {offsets = [0, 0], sizes = [1, 128], strides = [1, 1]} : vector<16x128xf32> to vector<1x128xf32>
    %c0_35 = arith.constant 0 : index
    %c0_36 = arith.constant 0 : index
    %c0_37 = arith.constant 0 : index
    %55 = vector.load %arg4[%c0_35, %c0_36, %c0_37] : memref<16x128x32xf32, #tpu.memory_space<vmem>>, vector<1x128x32xf32>
    %56 = vector.shape_cast %55 : vector<1x128x32xf32> to vector<128x32xf32>
    %cst_38 = arith.constant dense<0.000000e+00> : vector<1x32xf32>
    %57 = tpu.matmul %54, %56, %cst_38 {dimension_numbers = #tpu.dot_dimension_numbers<[1], [0], [0], [1], [0, 0, 1, 1], [], []>} : vector<1x128xf32>, vector<128x32xf32>, vector<1x32xf32> -> vector<1x32xf32>
    %58 = arith.addf %53, %57 : vector<1x32xf32>
    %59 = vector.extract_strided_slice %52 {offsets = [1, 0], sizes = [1, 128], strides = [1, 1]} : vector<16x128xf32> to vector<1x128xf32>
    %c1_39 = arith.constant 1 : index
    %c0_40 = arith.constant 0 : index
    %c0_41 = arith.constant 0 : index
    %60 = vector.load %arg4[%c1_39, %c0_40, %c0_41] : memref<16x128x32xf32, #tpu.memory_space<vmem>>, vector<1x128x32xf32>
    %61 = vector.shape_cast %60 : vector<1x128x32xf32> to vector<128x32xf32>
    %cst_42 = arith.constant dense<0.000000e+00> : vector<1x32xf32>
    %62 = tpu.matmul %59, %61, %cst_42 {dimension_numbers = #tpu.dot_dimension_numbers<[1], [0], [0], [1], [0, 0, 1, 1], [], []>} : vector<1x128xf32>, vector<128x32xf32>, vector<1x32xf32> -> vector<1x32xf32>
    %63 = arith.addf %58, %62 : vector<1x32xf32>
    %64 = vector.extract_strided_slice %52 {offsets = [2, 0], sizes = [1, 128], strides = [1, 1]} : vector<16x128xf32> to vector<1x128xf32>
    %c2_43 = arith.constant 2 : index
    %c0_44 = arith.constant 0 : index
    %c0_45 = arith.constant 0 : index
    %65 = vector.load %arg4[%c2_43, %c0_44, %c0_45] : memref<16x128x32xf32, #tpu.memory_space<vmem>>, vector<1x128x32xf32>
    %66 = vector.shape_cast %65 : vector<1x128x32xf32> to vector<128x32xf32>
    %cst_46 = arith.constant dense<0.000000e+00> : vector<1x32xf32>
    %67 = tpu.matmul %64, %66, %cst_46 {dimension_numbers = #tpu.dot_dimension_numbers<[1], [0], [0], [1], [0, 0, 1, 1], [], []>} : vector<1x128xf32>, vector<128x32xf32>, vector<1x32xf32> -> vector<1x32xf32>
    %68 = arith.addf %63, %67 : vector<1x32xf32>
    %69 = vector.extract_strided_slice %52 {offsets = [3, 0], sizes = [1, 128], strides = [1, 1]} : vector<16x128xf32> to vector<1x128xf32>
    %c3_47 = arith.constant 3 : index
    %c0_48 = arith.constant 0 : index
    %c0_49 = arith.constant 0 : index
    %70 = vector.load %arg4[%c3_47, %c0_48, %c0_49] : memref<16x128x32xf32, #tpu.memory_space<vmem>>, vector<1x128x32xf32>
    %71 = vector.shape_cast %70 : vector<1x128x32xf32> to vector<128x32xf32>
    %cst_50 = arith.constant dense<0.000000e+00> : vector<1x32xf32>
    %72 = tpu.matmul %69, %71, %cst_50 {dimension_numbers = #tpu.dot_dimension_numbers<[1], [0], [0], [1], [0, 0, 1, 1], [], []>} : vector<1x128xf32>, vector<128x32xf32>, vector<1x32xf32> -> vector<1x32xf32>
    %73 = arith.addf %68, %72 : vector<1x32xf32>
    %74 = vector.extract_strided_slice %52 {offsets = [4, 0], sizes = [1, 128], strides = [1, 1]} : vector<16x128xf32> to vector<1x128xf32>
    %c4_51 = arith.constant 4 : index
    %c0_52 = arith.constant 0 : index
    %c0_53 = arith.constant 0 : index
    %75 = vector.load %arg4[%c4_51, %c0_52, %c0_53] : memref<16x128x32xf32, #tpu.memory_space<vmem>>, vector<1x128x32xf32>
    %76 = vector.shape_cast %75 : vector<1x128x32xf32> to vector<128x32xf32>
    %cst_54 = arith.constant dense<0.000000e+00> : vector<1x32xf32>
    %77 = tpu.matmul %74, %76, %cst_54 {dimension_numbers = #tpu.dot_dimension_numbers<[1], [0], [0], [1], [0, 0, 1, 1], [], []>} : vector<1x128xf32>, vector<128x32xf32>, vector<1x32xf32> -> vector<1x32xf32>
    %78 = arith.addf %73, %77 : vector<1x32xf32>
    %79 = vector.extract_strided_slice %52 {offsets = [5, 0], sizes = [1, 128], strides = [1, 1]} : vector<16x128xf32> to vector<1x128xf32>
    %c5_55 = arith.constant 5 : index
    %c0_56 = arith.constant 0 : index
    %c0_57 = arith.constant 0 : index
    %80 = vector.load %arg4[%c5_55, %c0_56, %c0_57] : memref<16x128x32xf32, #tpu.memory_space<vmem>>, vector<1x128x32xf32>
    %81 = vector.shape_cast %80 : vector<1x128x32xf32> to vector<128x32xf32>
    %cst_58 = arith.constant dense<0.000000e+00> : vector<1x32xf32>
    %82 = tpu.matmul %79, %81, %cst_58 {dimension_numbers = #tpu.dot_dimension_numbers<[1], [0], [0], [1], [0, 0, 1, 1], [], []>} : vector<1x128xf32>, vector<128x32xf32>, vector<1x32xf32> -> vector<1x32xf32>
    %83 = arith.addf %78, %82 : vector<1x32xf32>
    %84 = vector.extract_strided_slice %52 {offsets = [6, 0], sizes = [1, 128], strides = [1, 1]} : vector<16x128xf32> to vector<1x128xf32>
    %c6_59 = arith.constant 6 : index
    %c0_60 = arith.constant 0 : index
    %c0_61 = arith.constant 0 : index
    %85 = vector.load %arg4[%c6_59, %c0_60, %c0_61] : memref<16x128x32xf32, #tpu.memory_space<vmem>>, vector<1x128x32xf32>
    %86 = vector.shape_cast %85 : vector<1x128x32xf32> to vector<128x32xf32>
    %cst_62 = arith.constant dense<0.000000e+00> : vector<1x32xf32>
    %87 = tpu.matmul %84, %86, %cst_62 {dimension_numbers = #tpu.dot_dimension_numbers<[1], [0], [0], [1], [0, 0, 1, 1], [], []>} : vector<1x128xf32>, vector<128x32xf32>, vector<1x32xf32> -> vector<1x32xf32>
    %88 = arith.addf %83, %87 : vector<1x32xf32>
    %89 = vector.extract_strided_slice %52 {offsets = [7, 0], sizes = [1, 128], strides = [1, 1]} : vector<16x128xf32> to vector<1x128xf32>
    %c7_63 = arith.constant 7 : index
    %c0_64 = arith.constant 0 : index
    %c0_65 = arith.constant 0 : index
    %90 = vector.load %arg4[%c7_63, %c0_64, %c0_65] : memref<16x128x32xf32, #tpu.memory_space<vmem>>, vector<1x128x32xf32>
    %91 = vector.shape_cast %90 : vector<1x128x32xf32> to vector<128x32xf32>
    %cst_66 = arith.constant dense<0.000000e+00> : vector<1x32xf32>
    %92 = tpu.matmul %89, %91, %cst_66 {dimension_numbers = #tpu.dot_dimension_numbers<[1], [0], [0], [1], [0, 0, 1, 1], [], []>} : vector<1x128xf32>, vector<128x32xf32>, vector<1x32xf32> -> vector<1x32xf32>
    %93 = arith.addf %88, %92 : vector<1x32xf32>
    %94 = vector.extract_strided_slice %52 {offsets = [8, 0], sizes = [1, 128], strides = [1, 1]} : vector<16x128xf32> to vector<1x128xf32>
    %c8_67 = arith.constant 8 : index
    %c0_68 = arith.constant 0 : index
    %c0_69 = arith.constant 0 : index
    %95 = vector.load %arg4[%c8_67, %c0_68, %c0_69] : memref<16x128x32xf32, #tpu.memory_space<vmem>>, vector<1x128x32xf32>
    %96 = vector.shape_cast %95 : vector<1x128x32xf32> to vector<128x32xf32>
    %cst_70 = arith.constant dense<0.000000e+00> : vector<1x32xf32>
    %97 = tpu.matmul %94, %96, %cst_70 {dimension_numbers = #tpu.dot_dimension_numbers<[1], [0], [0], [1], [0, 0, 1, 1], [], []>} : vector<1x128xf32>, vector<128x32xf32>, vector<1x32xf32> -> vector<1x32xf32>
    %98 = arith.addf %93, %97 : vector<1x32xf32>
    %99 = vector.extract_strided_slice %52 {offsets = [9, 0], sizes = [1, 128], strides = [1, 1]} : vector<16x128xf32> to vector<1x128xf32>
    %c9 = arith.constant 9 : index
    %c0_71 = arith.constant 0 : index
    %c0_72 = arith.constant 0 : index
    %100 = vector.load %arg4[%c9, %c0_71, %c0_72] : memref<16x128x32xf32, #tpu.memory_space<vmem>>, vector<1x128x32xf32>
    %101 = vector.shape_cast %100 : vector<1x128x32xf32> to vector<128x32xf32>
    %cst_73 = arith.constant dense<0.000000e+00> : vector<1x32xf32>
    %102 = tpu.matmul %99, %101, %cst_73 {dimension_numbers = #tpu.dot_dimension_numbers<[1], [0], [0], [1], [0, 0, 1, 1], [], []>} : vector<1x128xf32>, vector<128x32xf32>, vector<1x32xf32> -> vector<1x32xf32>
    %103 = arith.addf %98, %102 : vector<1x32xf32>
    %104 = vector.extract_strided_slice %52 {offsets = [10, 0], sizes = [1, 128], strides = [1, 1]} : vector<16x128xf32> to vector<1x128xf32>
    %c10 = arith.constant 10 : index
    %c0_74 = arith.constant 0 : index
    %c0_75 = arith.constant 0 : index
    %105 = vector.load %arg4[%c10, %c0_74, %c0_75] : memref<16x128x32xf32, #tpu.memory_space<vmem>>, vector<1x128x32xf32>
    %106 = vector.shape_cast %105 : vector<1x128x32xf32> to vector<128x32xf32>
    %cst_76 = arith.constant dense<0.000000e+00> : vector<1x32xf32>
    %107 = tpu.matmul %104, %106, %cst_76 {dimension_numbers = #tpu.dot_dimension_numbers<[1], [0], [0], [1], [0, 0, 1, 1], [], []>} : vector<1x128xf32>, vector<128x32xf32>, vector<1x32xf32> -> vector<1x32xf32>
    %108 = arith.addf %103, %107 : vector<1x32xf32>
    %109 = vector.extract_strided_slice %52 {offsets = [11, 0], sizes = [1, 128], strides = [1, 1]} : vector<16x128xf32> to vector<1x128xf32>
    %c11 = arith.constant 11 : index
    %c0_77 = arith.constant 0 : index
    %c0_78 = arith.constant 0 : index
    %110 = vector.load %arg4[%c11, %c0_77, %c0_78] : memref<16x128x32xf32, #tpu.memory_space<vmem>>, vector<1x128x32xf32>
    %111 = vector.shape_cast %110 : vector<1x128x32xf32> to vector<128x32xf32>
    %cst_79 = arith.constant dense<0.000000e+00> : vector<1x32xf32>
    %112 = tpu.matmul %109, %111, %cst_79 {dimension_numbers = #tpu.dot_dimension_numbers<[1], [0], [0], [1], [0, 0, 1, 1], [], []>} : vector<1x128xf32>, vector<128x32xf32>, vector<1x32xf32> -> vector<1x32xf32>
    %113 = arith.addf %108, %112 : vector<1x32xf32>
    %114 = vector.extract_strided_slice %52 {offsets = [12, 0], sizes = [1, 128], strides = [1, 1]} : vector<16x128xf32> to vector<1x128xf32>
    %c12 = arith.constant 12 : index
    %c0_80 = arith.constant 0 : index
    %c0_81 = arith.constant 0 : index
    %115 = vector.load %arg4[%c12, %c0_80, %c0_81] : memref<16x128x32xf32, #tpu.memory_space<vmem>>, vector<1x128x32xf32>
    %116 = vector.shape_cast %115 : vector<1x128x32xf32> to vector<128x32xf32>
    %cst_82 = arith.constant dense<0.000000e+00> : vector<1x32xf32>
    %117 = tpu.matmul %114, %116, %cst_82 {dimension_numbers = #tpu.dot_dimension_numbers<[1], [0], [0], [1], [0, 0, 1, 1], [], []>} : vector<1x128xf32>, vector<128x32xf32>, vector<1x32xf32> -> vector<1x32xf32>
    %118 = arith.addf %113, %117 : vector<1x32xf32>
    %119 = vector.extract_strided_slice %52 {offsets = [13, 0], sizes = [1, 128], strides = [1, 1]} : vector<16x128xf32> to vector<1x128xf32>
    %c13 = arith.constant 13 : index
    %c0_83 = arith.constant 0 : index
    %c0_84 = arith.constant 0 : index
    %120 = vector.load %arg4[%c13, %c0_83, %c0_84] : memref<16x128x32xf32, #tpu.memory_space<vmem>>, vector<1x128x32xf32>
    %121 = vector.shape_cast %120 : vector<1x128x32xf32> to vector<128x32xf32>
    %cst_85 = arith.constant dense<0.000000e+00> : vector<1x32xf32>
    %122 = tpu.matmul %119, %121, %cst_85 {dimension_numbers = #tpu.dot_dimension_numbers<[1], [0], [0], [1], [0, 0, 1, 1], [], []>} : vector<1x128xf32>, vector<128x32xf32>, vector<1x32xf32> -> vector<1x32xf32>
    %123 = arith.addf %118, %122 : vector<1x32xf32>
    %124 = vector.extract_strided_slice %52 {offsets = [14, 0], sizes = [1, 128], strides = [1, 1]} : vector<16x128xf32> to vector<1x128xf32>
    %c14 = arith.constant 14 : index
    %c0_86 = arith.constant 0 : index
    %c0_87 = arith.constant 0 : index
    %125 = vector.load %arg4[%c14, %c0_86, %c0_87] : memref<16x128x32xf32, #tpu.memory_space<vmem>>, vector<1x128x32xf32>
    %126 = vector.shape_cast %125 : vector<1x128x32xf32> to vector<128x32xf32>
    %cst_88 = arith.constant dense<0.000000e+00> : vector<1x32xf32>
    %127 = tpu.matmul %124, %126, %cst_88 {dimension_numbers = #tpu.dot_dimension_numbers<[1], [0], [0], [1], [0, 0, 1, 1], [], []>} : vector<1x128xf32>, vector<128x32xf32>, vector<1x32xf32> -> vector<1x32xf32>
    %128 = arith.addf %123, %127 : vector<1x32xf32>
    %129 = vector.extract_strided_slice %52 {offsets = [15, 0], sizes = [1, 128], strides = [1, 1]} : vector<16x128xf32> to vector<1x128xf32>
    %c15 = arith.constant 15 : index
    %c0_89 = arith.constant 0 : index
    %c0_90 = arith.constant 0 : index
    %130 = vector.load %arg4[%c15, %c0_89, %c0_90] : memref<16x128x32xf32, #tpu.memory_space<vmem>>, vector<1x128x32xf32>
    %131 = vector.shape_cast %130 : vector<1x128x32xf32> to vector<128x32xf32>
    %cst_91 = arith.constant dense<0.000000e+00> : vector<1x32xf32>
    %132 = tpu.matmul %129, %131, %cst_91 {dimension_numbers = #tpu.dot_dimension_numbers<[1], [0], [0], [1], [0, 0, 1, 1], [], []>} : vector<1x128xf32>, vector<128x32xf32>, vector<1x32xf32> -> vector<1x32xf32>
    %133 = arith.addf %128, %132 : vector<1x32xf32>
    %cst_92 = arith.constant 0.000000e+00 : f32
    %134 = vector.broadcast %cst_92 : f32 to vector<1x32xf32>
    %135 = arith.cmpf ogt, %133, %134 : vector<1x32xf32>
    %cst_93 = arith.constant 1.000000e+00 : f32
    %136 = vector.broadcast %cst_93 : f32 to vector<1x32xf32>
    %137 = arith.addf %133, %136 : vector<1x32xf32>
    %138 = math.exp %133 : vector<1x32xf32>
    %139 = arith.select %135, %137, %138 : vector<1x32xi1>, vector<1x32xf32>
    %c0_94 = arith.constant 0 : index
    %c0_95 = arith.constant 0 : index
    %c0_96 = arith.constant 0 : index
    %140 = vector.load %arg6[%c0_94, %c0_95, %c0_96] : memref<1x1x32xf32, #tpu.memory_space<vmem>>, vector<1x1x32xf32>
    %141 = vector.shape_cast %140 : vector<1x1x32xf32> to vector<1x32xf32>
    %142 = vector.shape_cast %139 : vector<1x32xf32> to vector<1x1x32xf32>
    tpu.vector_store %arg6[%c0_94, %c0_95, %c0_96], %142 {strides = array<i32>} : memref<1x1x32xf32, #tpu.memory_space<vmem>>, vector<1x1x32xf32>,
    return
  }
  func.func @transform_0(%arg0: i32) -> (i32, i32, i32) {
    %c0_i32 = arith.constant 0 : i32
    %c0_i32_0 = arith.constant 0 : i32
    %c0_i32_1 = arith.constant 0 : i32
    return %arg0, %c0_i32, %c0_i32_0 : i32, i32, i32
  }
  func.func @transform_1(%arg0: i32) -> (i32, i32, i32) {
    %c0_i32 = arith.constant 0 : i32
    %c0_i32_0 = arith.constant 0 : i32
    %c0_i32_1 = arith.constant 0 : i32
    %c0_i32_2 = arith.constant 0 : i32
    return %c0_i32, %c0_i32_0, %c0_i32_1 : i32, i32, i32
  }
  func.func @transform_2(%arg0: i32) -> (i32, i32) {
    %c0_i32 = arith.constant 0 : i32
    %c0_i32_0 = arith.constant 0 : i32
    %c0_i32_1 = arith.constant 0 : i32
    return %c0_i32, %c0_i32_0 : i32, i32
  }
  func.func @transform_3(%arg0: i32) -> (i32, i32, i32) {
    %c0_i32 = arith.constant 0 : i32
    %c0_i32_0 = arith.constant 0 : i32
    %c0_i32_1 = arith.constant 0 : i32
    %c0_i32_2 = arith.constant 0 : i32
    return %c0_i32, %c0_i32_0, %c0_i32_1 : i32, i32, i32
  }
  func.func @transform_4(%arg0: i32) -> (i32, i32) {
    %c0_i32 = arith.constant 0 : i32
    %c0_i32_0 = arith.constant 0 : i32
    %c0_i32_1 = arith.constant 0 : i32
    return %c0_i32, %c0_i32_0 : i32, i32
  }
  func.func @transform_5(%arg0: i32) -> (i32, i32, i32) {
    %c0_i32 = arith.constant 0 : i32
    %c0_i32_0 = arith.constant 0 : i32
    %c0_i32_1 = arith.constant 0 : i32
    return %arg0, %c0_i32, %c0_i32_0 : i32, i32, i32
  }
}

</mosaic_0001>

<bundles_post_ra>
// kernel: tile.8
= control target key start
LH: loop header
LB: loop body
LE: loop exit
PB: predicated region body
PF: predicated region fallthrough
CT: control target
= control target key end

     0   :  { %s28_s0 = inlined_call_operand.vmem [shape: f32[8], index: 0, kind: input, shape index: {}]   ;;  %s29_s1 = inlined_call_operand.vmem [shape: f32[16,8], index: 1, kind: output, shape index: {}]  }
   0x1   :  { %v4_v0 = vld [vmem:[%s28_s0] ss:$0 sm:$0xff] }
   0x2   :  { %5 = vst [vmem:[%s29_s1] sm:$0xff] %v4_v0  ;;  %8 = vst [vmem:[%s29_s1 + $0x8] sm:$0xff] %v4_v0 }

// kernel: tile.9
= control target key start
LH: loop header
LB: loop body
LE: loop exit
PB: predicated region body
PF: predicated region fallthrough
CT: control target
= control target key end

     0   :  { %s133_s10 = smov 120   ;;  %s134_s11 = smov 104   ;;  %vm3_vm0 = vcmask 64512   ;;  %vm9_vm1 = vcmask 1048512   ;;  %vm15_vm2 = vcmask 982912   ;;  %vm21_vm3 = vcmask 917312   ;;  %s209_s0 = inlined_call_operand.vmem [shape: f32[16,8], index: 0, kind: input, shape index: {}]   ;;  %s210_s1 = inlined_call_operand.vmem [shape: f32[1,128], index: 1, kind: output, shape index: {}]  }
   0x1   :  { %v103_v0 = vld [vmem:[%s209_s0 + $0xf] sm:$0x1]   ;;  %v105_v1 = vld [vmem:[%s209_s0 + $0xd] sm:$0x1]   ;;  %v104_v2 = vld [vmem:[%s209_s0 + $0xe] sm:$0x1]  }
   0x2   :  { %7 = vrot.lane.b32.xlu0 %v103_v0, %s133_s10  ;;  %19 = vrot.lane.b32.xlu1 %v105_v1, %s134_s11  ;;  %v106_v3 = vld [vmem:[%s209_s0 + $0xc] sm:$0x1]   ;;  %s135_s16 = smov 112   ;;  %s136_s17 = smov 96   ;;  %v107_v4 = vld [vmem:[%s209_s0 + $0xb] sm:$0x1]  }
   0x3   :  { %v108_v5 = vld [vmem:[%s209_s0 + $0xa] sm:$0x1]   ;;  %v2_v6 = vld [vmem:[%s209_s0] sm:$0x1]   ;;  %s137_s24 = smov 88   ;;  %s138_s25 = smov 80  }
   0x4   :  { %4 = vst.msk [vmem:[#allocation0] sm:$0x1] %vm3_vm0, %v2_v6   ;;  %v109_v7 = vld [vmem:[%s209_s0 + $0x9] sm:$0x1]   ;;  %v110_v8 = vld [vmem:[%s209_s0 + $0x8] sm:$0x1]  }
   0x5   :  { %s139_s30 = smov 72   ;;  %s140_s2 = smov 64   ;;  %v111_v9 = vld [vmem:[%s209_s0 + $0x7] sm:$0x1]   ;;  %v112_v10 = vld [vmem:[%s209_s0 + $0x6] sm:$0x1]  }
   0x6   :  { %13 = vrot.lane.b32.xlu0 %v104_v2, %s135_s16  ;;  %25 = vrot.lane.b32.xlu1 %v106_v3, %s136_s17  ;;  %s141_s7 = smov 56   ;;  %s142_s8 = smov 48   ;;  %v113_v11 = vld [vmem:[%s209_s0 + $0x5] sm:$0x1]   ;;  %v114_v12 = vld [vmem:[%s209_s0 + $0x4] sm:$0x1]  }
   0x7   :  { %s143_s13 = smov 40   ;;  %s144_s14 = smov 32   ;;  %v115_v13 = vld [vmem:[%s209_s0 + $0x3] sm:$0x1]   ;;  %v116_v14 = vld [vmem:[%s209_s0 + $0x2] sm:$0x1]  }
   0x8   :  { %s145_s19 = smov 24   ;;  %s146_s20 = smov 16   ;;  %v117_v15 = vld [vmem:[%s209_s0 + $0x1] sm:$0x1]   ;;  %vm27_vm4 = vcmask 851712   ;;  %vm33_vm5 = vcmask 786112  }
   0x9   :  { %s147_s0 = smov 8   ;;  %vm39_vm6 = vcmask 720512   ;;  %vm45_vm7 = vcmask 654912   ;;  %vm51_vm8 = vcmask 589312   ;;  %vm57_vm9 = vcmask 523712  }
   0xa   :  { %31 = vrot.lane.b32.xlu0 %v107_v4, %s137_s24  ;;  %37 = vrot.lane.b32.xlu1 %v108_v5, %s138_s25  ;;  %vm63_vm10 = vcmask 458112   ;;  %vm69_vm11 = vcmask 392512   ;;  %vm75_vm12 = vcmask 326912   ;;  %vm81_vm13 = vcmask 261312  }
   0xb   :  { %vm87_vm14 = vcmask 195712   ;;  %vm93_vm15 = vcmask 130112  }
   0xe   :  { %43 = vrot.lane.b32.xlu0 %v109_v7, %s139_s30  ;;  %49 = vrot.lane.b32.xlu1 %v110_v8, %s140_s2 }
  0x12   :  { %55 = vrot.lane.b32.xlu0 %v111_v9, %s141_s7  ;;  %61 = vrot.lane.b32.xlu1 %v112_v10, %s142_s8 }
  0x16   :  { %67 = vrot.lane.b32.xlu0 %v113_v11, %s143_s13  ;;  %73 = vrot.lane.b32.xlu1 %v114_v12, %s144_s14 }
  0x1a   :  { %79 = vrot.lane.b32.xlu0 %v115_v13, %s145_s19  ;;  %85 = vrot.lane.b32.xlu1 %v116_v14, %s146_s20 }
  0x1e   :  { %91 = vrot.lane.b32.xlu0 %v117_v15, %s147_s0 }
  0x74   :  { %v8_v16 = vpop.permute.xlu0 %7   ;;  %v20_v17 = vpop.permute.xlu1 %19  }
  0x75   :  { %10 = vst.msk [vmem:[#allocation0] sm:$0x1] %vm9_vm1, %v8_v16  }
  0x78   :  { %v14_v18 = vpop.permute.xlu0 %13   ;;  %v26_v19 = vpop.permute.xlu1 %25  }
  0x79   :  { %16 = vst.msk [vmem:[#allocation0] sm:$0x1] %vm15_vm2, %v14_v18  }
  0x7a   :  { %22 = vst.msk [vmem:[#allocation0] sm:$0x1] %vm21_vm3, %v20_v17  }
  0x7b   :  { %28 = vst.msk [vmem:[#allocation0] sm:$0x1] %vm27_vm4, %v26_v19  }
  0x7c   :  { %v32_v20 = vpop.permute.xlu0 %31   ;;  %v38_v21 = vpop.permute.xlu1 %37  }
  0x7d   :  { %34 = vst.msk [vmem:[#allocation0] sm:$0x1] %vm33_vm5, %v32_v20  }
  0x7e   :  { %40 = vst.msk [vmem:[#allocation0] sm:$0x1] %vm39_vm6, %v38_v21  }
  0x80   :  { %v44_v22 = vpop.permute.xlu0 %43   ;;  %v50_v23 = vpop.permute.xlu1 %49  }
  0x81   :  { %46 = vst.msk [vmem:[#allocation0] sm:$0x1] %vm45_vm7, %v44_v22  }
  0x82   :  { %52 = vst.msk [vmem:[#allocation0] sm:$0x1] %vm51_vm8, %v50_v23  }
  0x84   :  { %v56_v24 = vpop.permute.xlu0 %55   ;;  %v62_v25 = vpop.permute.xlu1 %61  }
  0x85   :  { %58 = vst.msk [vmem:[#allocation0] sm:$0x1] %vm57_vm9, %v56_v24  }
  0x86   :  { %64 = vst.msk [vmem:[#allocation0] sm:$0x1] %vm63_vm10, %v62_v25  }
  0x88   :  { %v68_v26 = vpop.permute.xlu0 %67   ;;  %v74_v27 = vpop.permute.xlu1 %73  }
  0x89   :  { %70 = vst.msk [vmem:[#allocation0] sm:$0x1] %vm69_vm11, %v68_v26  }
  0x8a   :  { %76 = vst.msk [vmem:[#allocation0] sm:$0x1] %vm75_vm12, %v74_v27  }
  0x8c   :  { %v80_v28 = vpop.permute.xlu0 %79   ;;  %v86_v29 = vpop.permute.xlu1 %85  }
  0x8d   :  { %82 = vst.msk [vmem:[#allocation0] sm:$0x1] %vm81_vm13, %v80_v28  }
  0x8e   :  { %88 = vst.msk [vmem:[#allocation0] sm:$0x1] %vm87_vm14, %v86_v29  }
  0x90   :  { %v92_v30 = vpop.permute.xlu0 %91  }
  0x91   :  { %94 = vst.msk [vmem:[#allocation0] sm:$0x1] %vm93_vm15, %v92_v30  }
  0x98   :  { %v99_v31 = vld [vmem:[#allocation0] sm:$0x1] }
  0x99   :  { %102 = vst [vmem:[%s210_s1] sm:$0x1] %v99_v31 }

// kernel: encoder_forward.1
= control target key start
LH: loop header
LB: loop body
LE: loop exit
PB: predicated region body
PF: predicated region fallthrough
CT: control target
= control target key end

     0   :  { %10 = vsyncpa [#allocation3], 0  ;;  %s5605_s0 = inlined_call_operand.vmem [shape: f32[2,18,72], index: 0, kind: input, shape index: {}]   ;;  %s5606_s1 = inlined_call_operand.vmem [shape: f32[9,64,128], index: 1, kind: input, shape index: {}]   ;;  %s5607_s2 = inlined_call_operand.vmem [shape: f32[1,128], index: 2, kind: input, shape index: {}]   ;;  %s5608_s3 = inlined_call_operand.vmem [shape: f32[16,128,32], index: 3, kind: input, shape index: {}]   ;;  %s5609_s4 = inlined_call_operand.vmem [shape: f32[1,32], index: 4, kind: input, shape index: {}]   ;;  %s5610_s5 = inlined_call_operand.hbm [shape: f32[2,1,32], index: 5, kind: output, shape index: {}]  }
   0x1   :  { %12 = vsyncpa [#allocation3 + $0x1], 0  ;;  %s4161_s18 = smov 0   ;;  %s4163_s19 = smov 0  }
   0x2   :  { %s4165_s20 = smov 0   ;;  %s4167_s21 = smov 0  }
   0x3 LB: > { %s4182_s22 = sadd.s32 4294967295, %s4124_s21   ;;  %s2594_s23 = sadd.s32 4294967294, %s4124_s21   ;;  %s4124_s21 = sphi %s4167_s21, %s5616_s21   ;;  %s4120_s20 = sphi %s4165_s20, %s5615_s20   ;;  %s4116_s19 = sphi %s4163_s19, %s5614_s19   ;;  %s4112_s18 = sphi %s4161_s18, %s5613_s18  }
   0x4   : > { %s4186_s24 = sadd.s32 1, %s4124_s21   ;;  %s135_s25 = sadd.s32 1, %s4120_s20 }
   0x5   : > { %s132_s26 = ssub.s32 %s4124_s21, %s4186_s24  ;;  %p145_p0 = scmp.ne.s32.totalorder %s4120_s20, %s4116_s19 }
   0x6   : > { %p133_p1 = scmp.eq.s32.totalorder %s132_s26, 0  ;;  %p146_p2 = scmp.eq.s32.totalorder %s4182_s22, 1 }
   0x7   : > { %p151_p3 = scmp.ne.s32.totalorder %s4116_s19, %s4112_s18  ;;  %p152_p4 = scmp.eq.s32.totalorder %s2594_s23, 1 }
   0x8   : > { %s4197_s27 = scalar_select %p133_p1, %s4120_s20, %s135_s25  }
   0x9   : > { %p4199_p5 = por %p146_p2, %p145_p0  ;;  %p4203_p6 = por %p152_p4, %p151_p3 }
   0xa   : > { %p2597_p7 = scmp.ge.s32.totalorder %s4124_s21, 1  ;;  %p190_p8 = scmp.lt.s32.totalorder %s4124_s21, 3 }
   0xc   : > { %p191_p9 = pnand %p2597_p7, %p190_p8 }
   0xd   : > { %p217_p10 = scmp.lt.s32.totalorder (!%p191_p9), %s4182_s22, 1  ;;  %s4126_s14 = smov (!%p191_p9), 124  }
   0xe   : > { %194 = sbr.rel (%p191_p9) target bundleno = 874 (0x36a), region = 40  ;;  %s4127_s15 = smov (!%p191_p9), 120  }
   0xf   : > { %s2922_s25 = sshll.u32 (!%p191_p9), %s4182_s22, 4 }
  0x10   : > { %s5570_s8 = scalar_lea.hbm (!%p191_p9), %s5610_s5, %s2922_s25 }
  0x13   : > { %v2606_v0 = vld [vmem:[%s5606_s1 + $0x78] sm:$0xff]  ;;  %v2605_v2 = vld [vmem:[%s5606_s1 + $0x70] sm:$0xff]  ;;  %s218_s13 = scalar_select %p217_p10, %s4182_s22, 1  ;;  %v2604_v4 = vld [vmem:[%s5606_s1 + $0x68] sm:$0xff]  ;;  %vm511_vm0 = vcmask 1046528   ;;  %vm795_vm1 = vcmask 1045504  }
  0x14   : > { %v232_v1 = vld [vmem:[%s5606_s1 + $0x38] sm:$0xff]  ;;  %3287 = vmatprep.subr.mxu0 %v2606_v0  ;;  %v231_v3 = vld [vmem:[%s5606_s1 + $0x30] sm:$0xff]  ;;  %v230_v5 = vld [vmem:[%s5606_s1 + $0x28] sm:$0xff]  ;;  %vm248_vm2 = vcmask 523264   ;;  %vm4129_vm3 = vmmov 0   ;;  %vm2524_vm4 = vcmask 253952  }
  0x15   : > { %3306 = vmatprep.subr.mxu1 %v232_v1  ;;  %3288 = vmatpush3.msra.mxu0 %v2606_v0  ;;  %s4018_s23 = smul.u32 24, %s218_s13  ;;  %v2603_v6 = vld [vmem:[%s5606_s1 + $0x60] sm:$0xff]  ;;  %v2602_v8 = vld [vmem:[%s5606_s1 + $0x58] sm:$0xff]  ;;  %v2601_v16 = vld [vmem:[%s5606_s1 + $0x50] sm:$0xff]  ;;  %s4130_s22 = smov [#allocation2]  }
  0x16   : > { %3307 = vmatpush3.msra.mxu1 %v232_v1  ;;  %3289 = vmatprep.subr.mxu0 %v2605_v2  ;;  %v229_v7 = vld [vmem:[%s5606_s1 + $0x20] sm:$0xff]  ;;  %v228_v11 = vld [vmem:[%s5606_s1 + $0x18] sm:$0xff]  ;;  %v227_v17 = vld [vmem:[%s5606_s1 + $0x10] sm:$0xff]  ;;  %s4068_s10 = sshll.u32 %s4130_s22, 4  ;;  %s4069_s10 = int_to_ptr.vmem [resolvable:$false] %s4068_s10 }
  0x17   : > { %3308 = vmatprep.subr.mxu1 %v231_v3  ;;  %3290 = vmatpush3.msra.mxu0 %v2605_v2  ;;  %s221_s9 = scalar_lea.vmem %s5605_s0, %s4018_s23  ;;  %v2600_v18 = vld [vmem:[%s5606_s1 + $0x48] sm:$0xff]  ;;  %v2599_v22 = vld [vmem:[%s5606_s1 + $0x40] sm:$0xff]  ;;  %v4271_v27 = vld [vmem:[%s5606_s1 + $0xb8] sm:$0xff]  ;;  %s215_s23 = sand.u32 1, %s4116_s19  }
  0x18   : > { %3309 = vmatpush3.msra.mxu1 %v231_v3  ;;  %3291 = vmatprep.subr.mxu0 %v2604_v4  ;;  %v222_v9 = vld [vmem:[%s221_s9] sm:$0xff]  ;;  %v224_v10 = vld [vmem:[%s221_s9 + $0x10] sm:$0x3]  ;;  %v223_v12 = vld [vmem:[%s221_s9 + $0x8] sm:$0xff]  ;;  %s216_s26 = scalar_lea.vmem [#allocation2], %s215_s23  ;;  %s4070_s11 = scalar_lea.vmem %s4069_s10, 32 }
  0x19   : > { %3310 = vmatprep.subr.mxu1 %v230_v5  ;;  %3292 = vmatpush3.msra.mxu0 %v2604_v4  ;;  %v512_v13 = vrot.slane %v222_v9, 1  ;;  %v513_v14 = vrot.slane %v223_v12, 1  ;;  %v515_v15 = vrot.slane %v224_v10, 1  ;;  %v226_v19 = vld [vmem:[%s5606_s1 + $0x8] sm:$0xff]  ;;  %v225_v23 = vld [vmem:[%s5606_s1] sm:$0xff]  ;;  %v796_v24 = vrot.slane %v222_v9, 2 }
  0x1a   : > { %3311 = vmatpush3.msra.mxu1 %v230_v5  ;;  %3293 = vmatprep.subr.mxu0 %v2603_v6  ;;  %v797_v25 = vrot.slane %v223_v12, 2  ;;  %v799_v26 = vrot.slane %v224_v10, 2  ;;  %v2628_v28 = vld [vmem:[%s5606_s1 + $0xf8] sm:$0xff]  ;;  %v2627_v31 = vld [vmem:[%s5606_s1 + $0xf0] sm:$0xff]  ;;  %v2626_v32 = vld [vmem:[%s5606_s1 + $0xe8] sm:$0xff]  ;;  %s2539_s30 = sshll.u32 %s216_s26, 4  ;;  %s2540_s30 = int_to_ptr.vmem [resolvable:$true] %s2539_s30 }
  0x1b   : > { %3312 = vmatprep.subr.mxu1 %v229_v7  ;;  %244 = vrot.lane.b32.xlu0 %v222_v9, %s4126_s14  ;;  %v514_v20 = vsel %vm511_vm0, %v512_v13, %v513_v14  ;;  %v516_v21 = vsel %vm511_vm0, %v513_v14, %v515_v15  ;;  %v2625_v33 = vld [vmem:[%s5606_s1 + $0xe0] sm:$0xff]  ;;  %v2624_v34 = vld [vmem:[%s5606_s1 + $0xd8] sm:$0xff]  ;;  %v2623_v35 = vld [vmem:[%s5606_s1 + $0xd0] sm:$0xff]  ;;  %s4064_s9 = scalar_lea.vmem %s2540_s30, 16  ;;  %p4071_p0 = scmp.lt.s32.totalorder %s2540_s30, %s4069_s10 }
  0x1c   : > { %416 = vrot.lane.b32.xlu1 %v222_v9, %s4127_s15  ;;  %3294 = vmatpush3.msra.mxu0 %v2603_v6  ;;  %v4278_v29 = vsel %vm795_vm1, %v796_v24, %v797_v25  ;;  %v4280_v30 = vsel %vm795_vm1, %v797_v25, %v799_v26  ;;  %v2622_v36 = vld [vmem:[%s5606_s1 + $0xc8] sm:$0xff]  ;;  %v2621_v37 = vld [vmem:[%s5606_s1 + $0xc0] sm:$0xff]  ;;  %v2648_v38 = vld [vmem:[%s5606_s1 + $0x178] sm:$0xff]  ;;  %p4065_p11 = scmp.ne.s32.totalorder %s2540_s30, %s4064_s9  ;;  %p4072_p1 = scmp.lt.s32.totalorder %s4070_s11, %s4064_s9 }
  0x1d   : > { %3313 = vmatpush3.msra.mxu1 %v229_v7  ;;  %3295 = vmatprep.subr.mxu0 %v2602_v8  ;;  %v2647_v39 = vld [vmem:[%s5606_s1 + $0x170] sm:$0xff]  ;;  %v2646_v40 = vld [vmem:[%s5606_s1 + $0x168] sm:$0xff]  ;;  %v2645_v41 = vld [vmem:[%s5606_s1 + $0x160] sm:$0xff] }
  0x1e   : > { %3314 = vmatprep.subr.mxu1 %v228_v11  ;;  %3296 = vmatpush3.msra.mxu0 %v2602_v8  ;;  %v2644_v42 = vld [vmem:[%s5606_s1 + $0x158] sm:$0xff]  ;;  %v2643_v43 = vld [vmem:[%s5606_s1 + $0x150] sm:$0xff]  ;;  %v2642_v44 = vld [vmem:[%s5606_s1 + $0x148] sm:$0xff]  ;;  %p4066_p12 = pnand %p4065_p11, %p4199_p5  ;;  %p4073_p2 = por %p4072_p1, %p4071_p0 }
  0x1f   : > { %3315 = vmatpush3.msra.mxu1 %v228_v11  ;;  %246 = vrot.lane.b32.xlu0 %v223_v12, %s4126_s14  ;;  %v2641_v45 = vld [vmem:[%s5606_s1 + $0x140] sm:$0xff]  ;;  %v2668_v46 = vld [vmem:[%s5606_s1 + $0x1f8] sm:$0xff]  ;;  %v2617_v50 = vld [vmem:[%s5606_s1 + $0xb0] sm:$0xff] }
  0x20   : > { %418 = vrot.lane.b32.xlu1 %v223_v12, %s4127_s15  ;;  %3297 = vmatprep.subr.mxu0 %v2601_v16  ;;  %v2616_v52 = vld [vmem:[%s5606_s1 + $0xa8] sm:$0xff]  ;;  %v2615_v53 = vld [vmem:[%s5606_s1 + $0xa0] sm:$0xff]  ;;  %v2614_v56 = vld [vmem:[%s5606_s1 + $0x98] sm:$0xff]  ;;  %p4067_p13 = pneg %p4066_p12 }
  0x21   : > { %3316 = vmatprep.subr.mxu1 %v227_v17  ;;  %3298 = vmatpush3.msra.mxu0 %v2601_v16  ;;  %v2613_v57 = vld [vmem:[%s5606_s1 + $0x90] sm:$0xff]  ;;  %v2612_v61 = vld [vmem:[%s5606_s1 + $0x88] sm:$0xff]  ;;  %v2611_v63 = vld [vmem:[%s5606_s1 + $0x80] sm:$0xff] }
  0x22   : > { %3317 = vmatpush3.msra.mxu1 %v227_v17  ;;  %3299 = vmatprep.subr.mxu0 %v2600_v18  ;;  %v2667_v60 = vld [vmem:[%s5606_s1 + $0x1f0] sm:$0xff]  ;;  %v2666_v62 = vld [vmem:[%s5606_s1 + $0x1e8] sm:$0xff]  ;;  %v2665_v0 = vld [vmem:[%s5606_s1 + $0x1e0] sm:$0xff]  ;;  %p4074_p3 = pnand %p4073_p2, %p4067_p13 }
  0x23   : > { %3318 = vmatprep.subr.mxu1 %v226_v19  ;;  %607 = vrot.lane.b32.xlu0 %v514_v20, %s4126_s14  ;;  %v2638_v1 = vld [vmem:[%s5606_s1 + $0x138] sm:$0xff]  ;;  %v2637_v2 = vld [vmem:[%s5606_s1 + $0x130] sm:$0xff]  ;;  %v2636_v4 = vld [vmem:[%s5606_s1 + $0x128] sm:$0xff] }
  0x24   : > { %609 = vrot.lane.b32.xlu1 %v516_v21, %s4126_s14  ;;  %3300 = vmatpush3.msra.mxu0 %v2600_v18  ;;  %v2664_v3 = vld [vmem:[%s5606_s1 + $0x1d8] sm:$0xff]  ;;  %v2663_v5 = vld [vmem:[%s5606_s1 + $0x1d0] sm:$0xff]  ;;  %v2635_v6 = vld [vmem:[%s5606_s1 + $0x120] sm:$0xff] }
  0x25   : > { %3319 = vmatpush3.msra.mxu1 %v226_v19  ;;  %3301 = vmatprep.subr.mxu0 %v2599_v22  ;;  %v2662_v7 = vld [vmem:[%s5606_s1 + $0x1c8] sm:$0xff]  ;;  %v2634_v8 = vld [vmem:[%s5606_s1 + $0x118] sm:$0xff]  ;;  %v2633_v10 = vld [vmem:[%s5606_s1 + $0x110] sm:$0xff] }
  0x26   : > { %3320 = vmatprep.subr.mxu1 %v225_v23  ;;  %3302 = vmatpush3.msra.mxu0 %v2599_v22  ;;  %v2631_v14 = vld [vmem:[%s5606_s1 + $0x100] sm:$0xff]  ;;  %v2658_v15 = vld [vmem:[%s5606_s1 + $0x1b8] sm:$0xff]  ;;  %v2657_v16 = vld [vmem:[%s5606_s1 + $0x1b0] sm:$0xff] }
  0x27   : > { %3321 = vmatpush3.msra.mxu1 %v225_v23  ;;  %701 = vrot.lane.b32.xlu0 %v514_v20, %s4127_s15  ;;  %v2656_v17 = vld [vmem:[%s5606_s1 + $0x1a8] sm:$0xff]  ;;  %v2655_v18 = vld [vmem:[%s5606_s1 + $0x1a0] sm:$0xff]  ;;  %v2654_v19 = vld [vmem:[%s5606_s1 + $0x198] sm:$0xff] }
  0x28   : > { %703 = vrot.lane.b32.xlu1 %v516_v21, %s4127_s15  ;;  %3325 = vmatprep.subr.mxu0 %v4271_v27  ;;  %v2651_v22 = vld [vmem:[%s5606_s1 + $0x180] sm:$0xff]  ;;  %v2678_v23 = vld [vmem:[%s5606_s1 + $0x238] sm:$0xff]  ;;  %v2677_v25 = vld [vmem:[%s5606_s1 + $0x230] sm:$0xff] }
  0x29   : > { %3322 = vmatprep.mubr.msk.f32.mxu1 %vm248_vm2, %v222_v9  ;;  %3344 = vmatprep.subr.mxu1 %v2628_v28  ;;  %v2661_v9 = vld [vmem:[%s5606_s1 + $0x1c0] sm:$0xff]  ;;  %v2676_v26 = vld [vmem:[%s5606_s1 + $0x228] sm:$0xff] }
  0x2a   : > { %3323 = vmatmul.mubr.msk.f32.vlgmr.msra.gmra.mxu1 %vm248_vm2, %v223_v12  ;;  %v2632_v12 = vld [vmem:[%s5606_s1 + $0x108] sm:$0xff] }
  0x2b   : > { %3345 = vmatpush3.msra.mxu1 %v2628_v28  ;;  %3360 = vmatprep.mubr.msk.f32.mxu1 %vm248_vm2, %v514_v20  ;;  %v2653_v20 = vld [vmem:[%s5606_s1 + $0x190] sm:$0xff]  ;;  %v2674_v28 = vld [vmem:[%s5606_s1 + $0x218] sm:$0xff] }
  0x2c   : > { %891 = vrot.lane.b32.xlu0 %v4278_v29, %s4126_s14  ;;  %893 = vrot.lane.b32.xlu1 %v4280_v30, %s4126_s14  ;;  %s2527_s14 = scalar_lea.sflag [#allocation3], %s215_s23 }
  0x2d   : > { %3346 = vmatprep.subr.mxu1 %v2627_v31 }
  0x2e   : > { %3347 = vmatpush3.msra.mxu1 %v2627_v31  ;;  %v2671_v31 = vld [vmem:[%s5606_s1 + $0x200] sm:$0xff] }
  0x2f   : > { %3348 = vmatprep.subr.mxu1 %v2626_v32 }
  0x30   : > { %985 = vrot.lane.b32.xlu0 %v4278_v29, %s4127_s15  ;;  %987 = vrot.lane.b32.xlu1 %v4280_v30, %s4127_s15 }
  0x31   : > { %3349 = vmatpush3.msra.mxu1 %v2626_v32 }
  0x32   : > { %3350 = vmatprep.subr.mxu1 %v2625_v33 }
  0x33   : > { %3351 = vmatpush3.msra.mxu1 %v2625_v33  ;;  %v1097_v33 = vld [vmem:[%s5608_s3 + $0x78] sm:$0xff] }
  0x34   : > { %3352 = vmatprep.subr.mxu1 %v2624_v34 }
  0x35   : > { %3353 = vmatpush3.msra.mxu1 %v2624_v34  ;;  %v2697_v34 = vld [vmem:[%s5608_s3 + $0xf8] sm:$0xff] }
  0x36   : > { %3354 = vmatprep.subr.mxu1 %v2623_v35 }
  0x37   : > { %3355 = vmatpush3.msra.mxu1 %v2623_v35  ;;  %v4128_v35 = vmov 0.0  }
  0x38   : > { %3356 = vmatprep.subr.mxu1 %v2622_v36 }
  0x39   : > { %3357 = vmatpush3.msra.mxu1 %v2622_v36  ;;  %v1096_v36 = vld [vmem:[%s5608_s3 + $0x70] sm:$0xff] }
  0x3a   : > { %3358 = vmatprep.subr.mxu1 %v2621_v37 }
  0x3b   : > { %3359 = vmatpush3.msra.mxu1 %v2621_v37  ;;  %v2696_v37 = vld [vmem:[%s5608_s3 + $0xf0] sm:$0xff] }
  0x3c   : > { %3361 = vmatmul.mubr.msk.f32.vlgmr.msra.gmra.mxu1 %vm248_vm2, %v516_v21  ;;  %3382 = vmatprep.subr.mxu1 %v2648_v38  ;;  %v2652_v21 = vld [vmem:[%s5606_s1 + $0x188] sm:$0xff] }
  0x3d   : > { %3383 = vmatpush3.msra.mxu1 %v2648_v38  ;;  %v1095_v38 = vld [vmem:[%s5608_s3 + $0x68] sm:$0xff] }
  0x3e   : > { %3384 = vmatprep.subr.mxu1 %v2647_v39 }
  0x3f   : > { %3385 = vmatpush3.msra.mxu1 %v2647_v39  ;;  %v2695_v39 = vld [vmem:[%s5608_s3 + $0xe8] sm:$0xff] }
  0x40   : > { %3386 = vmatprep.subr.mxu1 %v2646_v40 }
  0x41   : > { %3387 = vmatpush3.msra.mxu1 %v2646_v40  ;;  %v1094_v40 = vld [vmem:[%s5608_s3 + $0x60] sm:$0xff] }
  0x42   : > { %3388 = vmatprep.subr.mxu1 %v2645_v41 }
  0x43   : > { %3389 = vmatpush3.msra.mxu1 %v2645_v41  ;;  %v1093_v41 = vld [vmem:[%s5608_s3 + $0x58] sm:$0xff] }
  0x44   : > { %3390 = vmatprep.subr.mxu1 %v2644_v42 }
  0x45   : > { %3391 = vmatpush3.msra.mxu1 %v2644_v42  ;;  %v2694_v42 = vld [vmem:[%s5608_s3 + $0xe0] sm:$0xff] }
  0x46   : > { %3392 = vmatprep.subr.mxu1 %v2643_v43 }
  0x47   : > { %3393 = vmatpush3.msra.mxu1 %v2643_v43  ;;  %v1092_v43 = vld [vmem:[%s5608_s3 + $0x50] sm:$0xff] }
  0x48   : > { %3394 = vmatprep.subr.mxu1 %v2642_v44 }
  0x49   : > { %3395 = vmatpush3.msra.mxu1 %v2642_v44  ;;  %v2693_v44 = vld [vmem:[%s5608_s3 + $0xd8] sm:$0xff] }
  0x4a   : > { %3396 = vmatprep.subr.mxu1 %v2641_v45 }
  0x4b   : > { %3397 = vmatpush3.msra.mxu1 %v2641_v45  ;;  %v1091_v45 = vld [vmem:[%s5608_s3 + $0x48] sm:$0xff] }
  0x4c   : > { %3420 = vmatprep.subr.mxu1 %v2668_v46 }
  0x8d   : > { %v245_v47 = vpop.permute.xlu0 %244 }
  0x8e   : > { %v417_v48 = vpop.permute.xlu1 %416  ;;  %3303 = vmatprep.mubr.msk.f32.mxu0 %vm248_vm2, %v245_v47  ;;  %v1090_v47 = vld [vmem:[%s5608_s3 + $0x40] sm:$0xff] }
  0x91   : > { %v247_v49 = vpop.permute.xlu0 %246 }
  0x92   : > { %v419_v51 = vpop.permute.xlu1 %418  ;;  %3304 = vmatmul.mubr.msk.f32.vlgmr.msra.gmra.mxu0 %vm248_vm2, %v247_v49  ;;  %v1089_v49 = vld [vmem:[%s5608_s3 + $0x38] sm:$0xff] }
  0x93   : > { %3326 = vmatpush3.msra.mxu0 %v4271_v27  ;;  %3341 = vmatprep.mubr.msk.f32.mxu0 %vm248_vm2, %v417_v48  ;;  %v2675_v27 = vld [vmem:[%s5606_s1 + $0x220] sm:$0xff]  ;;  %v2691_v48 = vld [vmem:[%s5608_s3 + $0xc8] sm:$0xff] }
  0x94   : > { %3327 = vmatprep.subr.mxu0 %v2617_v50 }
  0x95   : > { %3328 = vmatpush3.msra.mxu0 %v2617_v50  ;;  %v608_v54 = vpop.permute.xlu0 %607  ;;  %v2690_v50 = vld [vmem:[%s5608_s3 + $0xc0] sm:$0xff] }
  0x96   : > { %v4356_v55 = vpop.permute.xlu1 %609  ;;  %3329 = vmatprep.subr.mxu0 %v2616_v52 }
  0x97   : > { %3330 = vmatpush3.msra.mxu0 %v2616_v52  ;;  %v2689_v52 = vld [vmem:[%s5608_s3 + $0xb8] sm:$0xff] }
  0x98   : > { %3331 = vmatprep.subr.mxu0 %v2615_v53 }
  0x99   : > { %3332 = vmatpush3.msra.mxu0 %v2615_v53  ;;  %v702_v58 = vpop.permute.xlu0 %701  ;;  %v1087_v53 = vld [vmem:[%s5608_s3 + $0x28] sm:$0xff] }
  0x9a   : > { %v704_v59 = vpop.permute.xlu1 %703  ;;  %3333 = vmatprep.subr.mxu0 %v2614_v56  ;;  %3398 = vmatprep.mubr.msk.f32.mxu1 %vm248_vm2, %v702_v58  ;;  %v2686_v58 = vld [vmem:[%s5608_s3 + $0xa0] sm:$0xff] }
  0x9b   : > { %3334 = vmatpush3.msra.mxu0 %v2614_v56  ;;  %3399 = vmatmul.mubr.msk.f32.vlgmr.msra.gmra.mxu1 %vm248_vm2, %v704_v59  ;;  %v2687_v56 = vld [vmem:[%s5608_s3 + $0xa8] sm:$0xff]  ;;  %v1084_v59 = vld [vmem:[%s5608_s3 + $0x10] sm:$0xff] }
  0x9c   : > { %3335 = vmatprep.subr.mxu0 %v2613_v57  ;;  %3421 = vmatpush3.msra.mxu1 %v2668_v46  ;;  %v2692_v46 = vld [vmem:[%s5608_s3 + $0xd0] sm:$0xff] }
  0x9d   : > { %3336 = vmatpush3.msra.mxu0 %v2613_v57  ;;  %3422 = vmatprep.subr.mxu1 %v2667_v60  ;;  %v1085_v57 = vld [vmem:[%s5608_s3 + $0x18] sm:$0xff] }
  0x9e   : > { %3337 = vmatprep.subr.mxu0 %v2612_v61  ;;  %3423 = vmatpush3.msra.mxu1 %v2667_v60  ;;  %v892_v11 = vpop.permute.xlu0 %891  ;;  %v894_v13 = vpop.permute.xlu1 %893  ;;  %v2685_v60 = vld [vmem:[%s5608_s3 + $0x98] sm:$0xff] }
  0x9f   : > { %3338 = vmatpush3.msra.mxu0 %v2612_v61  ;;  %3424 = vmatprep.subr.mxu1 %v2666_v62  ;;  %v1083_v61 = vld [vmem:[%s5608_s3 + $0x8] sm:$0xff] }
  0xa0   : > { %3339 = vmatprep.subr.mxu0 %v2611_v63  ;;  %3425 = vmatpush3.msra.mxu1 %v2666_v62  ;;  %v2684_v62 = vld [vmem:[%s5608_s3 + $0x90] sm:$0xff] }
  0xa1   : > { %3340 = vmatpush3.msra.mxu0 %v2611_v63  ;;  %3426 = vmatprep.subr.mxu1 %v2665_v0  ;;  %v1082_v63 = vld [vmem:[%s5608_s3] sm:$0xff] }
  0xa2   : > { %3342 = vmatmul.mubr.msk.f32.vlgmr.msra.gmra.mxu0 %vm248_vm2, %v419_v51  ;;  %3363 = vmatprep.subr.mxu0 %v2638_v1  ;;  %v986_v24 = vpop.permute.xlu0 %985  ;;  %v988_v32 = vpop.permute.xlu1 %987  ;;  %v1088_v51 = vld [vmem:[%s5608_s3 + $0x30] sm:$0xff] }
  0xa3   : > { %3364 = vmatpush3.msra.mxu0 %v2638_v1  ;;  %3379 = vmatprep.mubr.msk.f32.mxu0 %vm248_vm2, %v608_v54  ;;  %v2688_v54 = vld [vmem:[%s5608_s3 + $0xb0] sm:$0xff]  ;;  %v2682_v1 = vld [vmem:[%s5608_s3 + $0x80] sm:$0xff] }
  0xa4   : > { %3365 = vmatprep.subr.mxu0 %v2637_v2  ;;  %3427 = vmatpush3.msra.mxu1 %v2665_v0  ;;  %v2683_v0 = vld [vmem:[%s5608_s3 + $0x88] sm:$0xff] }
  0xa5   : > { %3366 = vmatpush3.msra.mxu0 %v2637_v2  ;;  %3428 = vmatprep.subr.mxu1 %v2664_v3 }
  0xa6   : > { %3367 = vmatprep.subr.mxu0 %v2636_v4  ;;  %3429 = vmatpush3.msra.mxu1 %v2664_v3 }
  0xa7   : > { %3368 = vmatpush3.msra.mxu0 %v2636_v4  ;;  %3430 = vmatprep.subr.mxu1 %v2663_v5 }
  0xa8   : > { %3369 = vmatprep.subr.mxu0 %v2635_v6  ;;  %3431 = vmatpush3.msra.mxu1 %v2663_v5 }
  0xa9   : > { %3370 = vmatpush3.msra.mxu0 %v2635_v6  ;;  %3432 = vmatprep.subr.mxu1 %v2662_v7 }
  0xaa   : > { %3371 = vmatprep.subr.mxu0 %v2634_v8  ;;  %3433 = vmatpush3.msra.mxu1 %v2662_v7 }
  0xab   : > { %3372 = vmatpush3.msra.mxu0 %v2634_v8  ;;  %3434 = vmatprep.subr.mxu1 %v2661_v9 }
  0xac   : > { %3373 = vmatprep.subr.mxu0 %v2633_v10  ;;  %3435 = vmatpush3.msra.mxu1 %v2661_v9 }
  0xad   : > { %3374 = vmatpush3.msra.mxu0 %v2633_v10  ;;  %3436 = vmatprep.mubr.msk.f32.mxu1 %vm248_vm2, %v892_v11 }
  0xae   : > { %3375 = vmatprep.subr.mxu0 %v2632_v12  ;;  %3437 = vmatmul.mubr.msk.f32.vlgmr.msra.gmra.mxu1 %vm248_vm2, %v894_v13 }
  0xaf   : > { %3376 = vmatpush3.msra.mxu0 %v2632_v12  ;;  %3458 = vmatprep.subr.mxu1 %v4128_v35 }
  0xb0   : > { %3377 = vmatprep.subr.mxu0 %v2631_v14  ;;  %3459 = vmatpush3.msra.mxu1 %v1097_v33 }
  0xb1   : > { %3378 = vmatpush3.msra.mxu0 %v2631_v14  ;;  %3460 = vmatprep.subr.mxu1 %v4128_v35 }
  0xb2   : > { %3380 = vmatmul.mubr.msk.f32.vlgmr.msra.gmra.mxu0 %vm248_vm2, %v4356_v55  ;;  %3401 = vmatprep.subr.mxu0 %v2658_v15  ;;  %v1086_v55 = vld [vmem:[%s5608_s3 + $0x20] sm:$0xff] }
  0xb3   : > { %3402 = vmatpush3.msra.mxu0 %v2658_v15  ;;  %3417 = vmatprep.mubr.msk.f32.mxu0 %vm248_vm2, %v4278_v29  ;;  %v2673_v29 = vld [vmem:[%s5606_s1 + $0x210] sm:$0xff] }
  0xb4   : > { %3403 = vmatprep.subr.mxu0 %v2657_v16  ;;  %3461 = vmatpush3.msra.mxu1 %v1096_v36 }
  0xb5   : > { %3404 = vmatpush3.msra.mxu0 %v2657_v16  ;;  %3462 = vmatprep.subr.mxu1 %v4128_v35 }
  0xb6   : > { %3405 = vmatprep.subr.mxu0 %v2656_v17  ;;  %3463 = vmatpush3.msra.mxu1 %v1095_v38 }
  0xb7   : > { %3406 = vmatpush3.msra.mxu0 %v2656_v17  ;;  %3464 = vmatprep.subr.mxu1 %v4128_v35 }
  0xb8   : > { %3407 = vmatprep.subr.mxu0 %v2655_v18  ;;  %3465 = vmatpush3.msra.mxu1 %v1094_v40 }
  0xb9   : > { %3408 = vmatpush3.msra.mxu0 %v2655_v18  ;;  %3466 = vmatprep.subr.mxu1 %v4128_v35 }
  0xba   : > { %3409 = vmatprep.subr.mxu0 %v2654_v19  ;;  %3467 = vmatpush3.msra.mxu1 %v1093_v41  ;;  %v2713_v41 = vld [vmem:[%s5608_s3 + $0x178] sm:$0xff] }
  0xbb   : > { %3410 = vmatpush3.msra.mxu0 %v2654_v19  ;;  %3468 = vmatprep.subr.mxu1 %v4128_v35 }
  0xbc   : > { %3411 = vmatprep.subr.mxu0 %v2653_v20  ;;  %3469 = vmatpush3.msra.mxu1 %v1092_v43  ;;  %v2712_v43 = vld [vmem:[%s5608_s3 + $0x170] sm:$0xff] }
  0xbd   : > { %3412 = vmatpush3.msra.mxu0 %v2653_v20  ;;  %3470 = vmatprep.subr.mxu1 %v4128_v35 }
  0xbe   : > { %3413 = vmatprep.subr.mxu0 %v2652_v21  ;;  %3471 = vmatpush3.msra.mxu1 %v1091_v45  ;;  %v2711_v45 = vld [vmem:[%s5608_s3 + $0x168] sm:$0xff] }
  0xbf   : > { %3414 = vmatpush3.msra.mxu0 %v2652_v21  ;;  %3472 = vmatprep.subr.mxu1 %v4128_v35 }
  0xc0   : > { %3415 = vmatprep.subr.mxu0 %v2651_v22  ;;  %3473 = vmatpush3.msra.mxu1 %v1090_v47  ;;  %v2710_v47 = vld [vmem:[%s5608_s3 + $0x160] sm:$0xff] }
  0xc1   : > { %3416 = vmatpush3.msra.mxu0 %v2651_v22  ;;  %3474 = vmatprep.subr.mxu1 %v4128_v35 }
  0xc2   : > { %3418 = vmatmul.mubr.msk.f32.vlgmr.msra.gmra.mxu0 %vm248_vm2, %v4280_v30  ;;  %3439 = vmatprep.subr.mxu0 %v2678_v23  ;;  %v2672_v30 = vld [vmem:[%s5606_s1 + $0x208] sm:$0xff] }
  0xc3   : > { %3440 = vmatpush3.msra.mxu0 %v2678_v23  ;;  %3455 = vmatprep.mubr.msk.f32.mxu0 %vm248_vm2, %v986_v24 }
  0xc4   : > { %3441 = vmatprep.subr.mxu0 %v2677_v25  ;;  %3475 = vmatpush3.msra.mxu1 %v1089_v49  ;;  %v2709_v49 = vld [vmem:[%s5608_s3 + $0x158] sm:$0xff] }
  0xc5   : > { %3442 = vmatpush3.msra.mxu0 %v2677_v25  ;;  %3476 = vmatprep.subr.mxu1 %v4128_v35 }
  0xc6   : > { %3443 = vmatprep.subr.mxu0 %v2676_v26  ;;  %3477 = vmatpush3.msra.mxu1 %v1088_v51  ;;  %v2708_v51 = vld [vmem:[%s5608_s3 + $0x150] sm:$0xff] }
  0xc7   : > { %3444 = vmatpush3.msra.mxu0 %v2676_v26  ;;  %3478 = vmatprep.subr.mxu1 %v4128_v35 }
  0xc8   : > { %3445 = vmatprep.subr.mxu0 %v2675_v27  ;;  %3479 = vmatpush3.msra.mxu1 %v1087_v53  ;;  %v2707_v53 = vld [vmem:[%s5608_s3 + $0x148] sm:$0xff] }
  0xc9   : > { %3446 = vmatpush3.msra.mxu0 %v2675_v27  ;;  %3480 = vmatprep.subr.mxu1 %v4128_v35 }
  0xca   : > { %3447 = vmatprep.subr.mxu0 %v2674_v28  ;;  %3481 = vmatpush3.msra.mxu1 %v1086_v55  ;;  %v2706_v55 = vld [vmem:[%s5608_s3 + $0x140] sm:$0xff] }
  0xcb   : > { %3448 = vmatpush3.msra.mxu0 %v2674_v28  ;;  %3482 = vmatprep.subr.mxu1 %v4128_v35 }
  0xcc   : > { %3449 = vmatprep.subr.mxu0 %v2673_v29  ;;  %3483 = vmatpush3.msra.mxu1 %v1085_v57  ;;  %v2705_v57 = vld [vmem:[%s5608_s3 + $0x138] sm:$0xff] }
  0xcd   : > { %3450 = vmatpush3.msra.mxu0 %v2673_v29  ;;  %3484 = vmatprep.subr.mxu1 %v4128_v35 }
  0xce   : > { %3451 = vmatprep.subr.mxu0 %v2672_v30  ;;  %3485 = vmatpush3.msra.mxu1 %v1084_v59  ;;  %v2704_v59 = vld [vmem:[%s5608_s3 + $0x130] sm:$0xff] }
  0xcf   : > { %3452 = vmatpush3.msra.mxu0 %v2672_v30  ;;  %3486 = vmatprep.subr.mxu1 %v4128_v35 }
  0xd0   : > { %3453 = vmatprep.subr.mxu0 %v2671_v31  ;;  %3487 = vmatpush3.msra.mxu1 %v1083_v61  ;;  %v2703_v61 = vld [vmem:[%s5608_s3 + $0x128] sm:$0xff] }
  0xd1   : > { %3454 = vmatpush3.msra.mxu0 %v2671_v31  ;;  %3488 = vmatprep.subr.mxu1 %v4128_v35 }
  0xd2   : > { %3456 = vmatmul.mubr.msk.f32.vlgmr.msra.gmra.mxu0 %vm248_vm2, %v988_v32  ;;  %3493 = vmatprep.subr.mxu0 %v4128_v35  ;;  %v2681_v32 = vld [vmem:[%s5607_s2] ss:$0 sm:$0xff] }
  0xd3   : > { %3494 = vmatpush3.msra.mxu0 %v2697_v34  ;;  %3489 = vmatpush3.msra.mxu1 %v1082_v63  ;;  %v2702_v63 = vld [vmem:[%s5608_s3 + $0x120] sm:$0xff] }
  0xd4   : > { %3495 = vmatprep.subr.mxu0 %v4128_v35  ;;  %3490 = vmatprep.mubr.msk.f32.mxu1 %vm4129_vm3, %v4128_v35 }
  0xd5   : > { %3496 = vmatpush3.msra.mxu0 %v2696_v37  ;;  %3528 = vmatprep.subr.mxu1 %v4128_v35 }
  0xd6   : > { %3497 = vmatprep.subr.mxu0 %v4128_v35  ;;  %3525 = vmatprep.mubr.msk.f32.mxu0 %vm4129_vm3, %v4128_v35 }
  0xd7   : > { %3498 = vmatpush3.msra.mxu0 %v2695_v39 }
  0xd8   : > { %3499 = vmatprep.subr.mxu0 %v4128_v35 }
  0xd9   : > { %3500 = vmatpush3.msra.mxu0 %v2694_v42 }
  0xda   : > { %3501 = vmatprep.subr.mxu0 %v4128_v35 }
  0xdb   : > { %3502 = vmatpush3.msra.mxu0 %v2693_v44  ;;  %v2729_v44 = vld [vmem:[%s5608_s3 + $0x1f8] sm:$0xff] }
  0xdc   : > { %3503 = vmatprep.subr.mxu0 %v4128_v35 }
  0xdd   : > { %3504 = vmatpush3.msra.mxu0 %v2692_v46  ;;  %v2728_v46 = vld [vmem:[%s5608_s3 + $0x1f0] sm:$0xff] }
  0xde   : > { %3505 = vmatprep.subr.mxu0 %v4128_v35 }
  0xdf   : > { %3506 = vmatpush3.msra.mxu0 %v2691_v48  ;;  %v2727_v48 = vld [vmem:[%s5608_s3 + $0x1e8] sm:$0xff] }
  0xe0   : > { %3507 = vmatprep.subr.mxu0 %v4128_v35 }
  0xe1   : > { %3508 = vmatpush3.msra.mxu0 %v2690_v50  ;;  %v2726_v50 = vld [vmem:[%s5608_s3 + $0x1e0] sm:$0xff] }
  0xe2   : > { %3509 = vmatprep.subr.mxu0 %v4128_v35 }
  0xe3   : > { %3510 = vmatpush3.msra.mxu0 %v2689_v52  ;;  %v2725_v52 = vld [vmem:[%s5608_s3 + $0x1d8] sm:$0xff] }
  0xe4   : > { %3511 = vmatprep.subr.mxu0 %v4128_v35 }
  0xe5   : > { %3512 = vmatpush3.msra.mxu0 %v2688_v54  ;;  %v2724_v54 = vld [vmem:[%s5608_s3 + $0x1d0] sm:$0xff] }
  0xe6   : > { %3513 = vmatprep.subr.mxu0 %v4128_v35 }
  0xe7   : > { %3514 = vmatpush3.msra.mxu0 %v2687_v56  ;;  %v2723_v56 = vld [vmem:[%s5608_s3 + $0x1c8] sm:$0xff] }
  0xe8   : > { %3515 = vmatprep.subr.mxu0 %v4128_v35 }
  0xe9   : > { %3516 = vmatpush3.msra.mxu0 %v2686_v58  ;;  %v2722_v58 = vld [vmem:[%s5608_s3 + $0x1c0] sm:$0xff] }
  0xea   : > { %3517 = vmatprep.subr.mxu0 %v4128_v35  ;;  %v3324_v3 = vpop.f32.mrf.mxu1 }
  0xeb   : > { %3518 = vmatpush3.msra.mxu0 %v2685_v60  ;;  %v2721_v60 = vld [vmem:[%s5608_s3 + $0x1b8] sm:$0xff] }
  0xec   : > { %3519 = vmatprep.subr.mxu0 %v4128_v35  ;;  %v398_v8 = vpop.f32.mrf.mxu1 }
  0xed   : > { %3520 = vmatpush3.msra.mxu0 %v2684_v62  ;;  %v2720_v62 = vld [vmem:[%s5608_s3 + $0x1b0] sm:$0xff] }
  0xee   : > { %3521 = vmatprep.subr.mxu0 %v4128_v35 }
  0xef   : > { %3522 = vmatpush3.msra.mxu0 %v2683_v0  ;;  %v2719_v0 = vld [vmem:[%s5608_s3 + $0x1a8] sm:$0xff] }
  0xf0   : > { %3523 = vmatprep.subr.mxu0 %v4128_v35 }
  0xf1   : > { %3524 = vmatpush3.msra.mxu0 %v2682_v1  ;;  %v2701_v1 = vld [vmem:[%s5608_s3 + $0x118] sm:$0xff] }
  0xf2   : > { %3563 = vmatprep.subr.mxu0 %v4128_v35 }
  0xfc   : > { %v3362_v9 = vpop.f32.mrf.mxu1 }
  0xfe   : > { %v587_v11 = vpop.f32.mrf.mxu1 }
 0x152   : > { %v3305_v2 = vpop.f32.mrf.mxu0 }
 0x153   : > { %v404_v5 = vadd.f32 %v3324_v3, %v3305_v2  ;;  %v2718_v2 = vld [vmem:[%s5608_s3 + $0x1a0] sm:$0xff]  ;;  %v2700_v3 = vld [vmem:[%s5608_s3 + $0x110] sm:$0xff] }
 0x154   : > { %v319_v4 = vpop.f32.mrf.mxu0 }
 0x155   : > { %v399_v19 = vadd.f32 %v398_v8, %v319_v4  ;;  %v2717_v4 = vld [vmem:[%s5608_s3 + $0x198] sm:$0xff]  ;;  %v2715_v8 = vld [vmem:[%s5608_s3 + $0x188] sm:$0xff] }
 0x15b   : > { %v3400_v14 = vpop.f32.mrf.mxu1 }
 0x15d   : > { %v775_v18 = vpop.f32.mrf.mxu1 }
 0x162   : > { %v3343_v6 = vpop.f32.mrf.mxu0 }
 0x163   : > { %v500_v7 = vadd.f32 %v3343_v6, %v404_v5  ;;  %v2699_v5 = vld [vmem:[%s5608_s3 + $0x108] sm:$0xff]  ;;  %v2716_v6 = vld [vmem:[%s5608_s3 + $0x190] sm:$0xff] }
 0x164   : > { %v490_v10 = vpop.f32.mrf.mxu0 }
 0x165   : > { %v597_v12 = vadd.f32 %v3362_v9, %v500_v7  ;;  %v499_v22 = vadd.f32 %v490_v10, %v399_v19  ;;  %v2698_v7 = vld [vmem:[%s5608_s3 + $0x100] sm:$0xff]  ;;  %v2741_v19 = vld [vmem:[%s5608_s3 + $0x258] sm:$0xff] }
 0x166   : > { %v2714_v10 = vld [vmem:[%s5608_s3 + $0x180] sm:$0xff] }
 0x167   : > { %v596_v25 = vadd.f32 %v587_v11, %v499_v22  ;;  %v2745_v11 = vld [vmem:[%s5608_s3 + $0x278] sm:$0xff] }
 0x168   : > { %v2757_v22 = vld [vmem:[%s5608_s3 + $0x2d8] sm:$0xff] }
 0x16e   : > { %v3438_v21 = vpop.f32.mrf.mxu1 }
 0x170   : > { %v965_v30 = vpop.f32.mrf.mxu1 }
 0x172   : > { %v3381_v13 = vpop.f32.mrf.mxu0 }
 0x173   : > { %v691_v15 = vadd.f32 %v3381_v13, %v597_v12  ;;  %v2744_v13 = vld [vmem:[%s5608_s3 + $0x270] sm:$0xff] }
 0x174   : > { %v681_v17 = vpop.f32.mrf.mxu0 }
 0x175   : > { %v785_v16 = vadd.f32 %v3400_v14, %v691_v15  ;;  %v690_v26 = vadd.f32 %v681_v17, %v596_v25  ;;  %v2761_v14 = vld [vmem:[%s5608_s3 + $0x2f8] sm:$0xff]  ;;  %v2743_v15 = vld [vmem:[%s5608_s3 + $0x268] sm:$0xff]  ;;  %v2742_v17 = vld [vmem:[%s5608_s3 + $0x260] sm:$0xff] }
 0x176   : > { %v2738_v25 = vld [vmem:[%s5608_s3 + $0x240] sm:$0xff] }
 0x177   : > { %v784_v28 = vadd.f32 %v775_v18, %v690_v26  ;;  %v2759_v18 = vld [vmem:[%s5608_s3 + $0x2e8] sm:$0xff] }
 0x178   : > { %v2755_v26 = vld [vmem:[%s5608_s3 + $0x2c8] sm:$0xff] }
 0x182   : > { %v3419_v20 = vpop.f32.mrf.mxu0 }
 0x183   : > { %v881_v23 = vadd.f32 %v3419_v20, %v785_v16  ;;  %v2760_v16 = vld [vmem:[%s5608_s3 + $0x2f0] sm:$0xff]  ;;  %v2758_v20 = vld [vmem:[%s5608_s3 + $0x2e0] sm:$0xff] }
 0x184   : > { %v871_v27 = vpop.f32.mrf.mxu0 }
 0x185   : > { %v975_v24 = vadd.f32 %v3438_v21, %v881_v23  ;;  %v880_v29 = vadd.f32 %v871_v27, %v784_v28  ;;  %v2740_v21 = vld [vmem:[%s5608_s3 + $0x250] sm:$0xff]  ;;  %v2739_v23 = vld [vmem:[%s5608_s3 + $0x248] sm:$0xff]  ;;  %v2737_v27 = vld [vmem:[%s5608_s3 + $0x238] sm:$0xff] }
 0x186   : > { %v2754_v28 = vld [vmem:[%s5608_s3 + $0x2c0] sm:$0xff] }
 0x187   : > { %v974_v33 = vadd.f32 %v965_v30, %v880_v29  ;;  %v2736_v29 = vld [vmem:[%s5608_s3 + $0x230] sm:$0xff]  ;;  %v2753_v30 = vld [vmem:[%s5608_s3 + $0x2b8] sm:$0xff] }
 0x192   : > { %v3457_v31 = vpop.f32.mrf.mxu0 }
 0x193   : > { %v1069_v34 = vadd.f32 %v3457_v31, %v975_v24  ;;  %v2756_v24 = vld [vmem:[%s5608_s3 + $0x2d0] sm:$0xff]  ;;  %v2735_v31 = vld [vmem:[%s5608_s3 + $0x228] sm:$0xff] }
 0x194   : > { %v1059_v36 = vpop.f32.mrf.mxu0 }
 0x195   : > { %v4614_v37 = vadd.f32 %v2681_v32, %v1069_v34  ;;  %v1068_v38 = vadd.f32 %v1059_v36, %v974_v33  ;;  %v2734_v33 = vld [vmem:[%s5608_s3 + $0x220] sm:$0xff]  ;;  %v2751_v34 = vld [vmem:[%s5608_s3 + $0x2a8] sm:$0xff]  ;;  %v2733_v36 = vld [vmem:[%s5608_s3 + $0x218] sm:$0xff] }
 0x197   : > { %v1077_v39 = vadd.f32 %v2681_v32, %v1068_v38  ;;  %v2752_v32 = vld [vmem:[%s5608_s3 + $0x2b0] sm:$0xff]  ;;  %v2750_v38 = vld [vmem:[%s5608_s3 + $0x2a0] sm:$0xff] }
 0x199   : > { %v4616_v40 = vmax.f32 %v1077_v39, 0.0  ;;  %v2732_v39 = vld [vmem:[%s5608_s3 + $0x210] sm:$0xff] }
 0x19b   : > { %3491 = vmatmul.mubr.f32.vlgmr.msra.gmra.mxu1 %v4616_v40  ;;  %v1187_v42 = vrot.slane %v4616_v40, 1  ;;  %v1277_v9 = vrot.slane %v4616_v40, 2  ;;  %v1367_v12 = vrot.slane %v4616_v40, 3 }
 0x19c   : > { %3529 = vmatpush3.msra.mxu1 %v2713_v41  ;;  %3560 = vmatprep.mubr.msk.f32.mxu1 %vm4129_vm3, %v4128_v35  ;;  %v2749_v41 = vld [vmem:[%s5608_s3 + $0x298] sm:$0xff] }
 0x19d   : > { %3530 = vmatprep.subr.mxu1 %v4128_v35  ;;  %3526 = vmatmul.mubr.f32.vlgmr.msra.gmra.mxu0 %v1187_v42  ;;  %v2731_v42 = vld [vmem:[%s5608_s3 + $0x208] sm:$0xff] }
 0x19e   : > { %3531 = vmatpush3.msra.mxu1 %v2712_v43  ;;  %3564 = vmatpush3.msra.mxu0 %v2729_v44  ;;  %v2748_v43 = vld [vmem:[%s5608_s3 + $0x290] sm:$0xff]  ;;  %v2730_v44 = vld [vmem:[%s5608_s3 + $0x200] sm:$0xff] }
 0x19f   : > { %3532 = vmatprep.subr.mxu1 %v4128_v35  ;;  %3565 = vmatprep.subr.mxu0 %v4128_v35 }
 0x1a0   : > { %3533 = vmatpush3.msra.mxu1 %v2711_v45  ;;  %3566 = vmatpush3.msra.mxu0 %v2728_v46  ;;  %v2747_v45 = vld [vmem:[%s5608_s3 + $0x288] sm:$0xff]  ;;  %v1457_v46 = vrot.slane %v4616_v40, 4 }
 0x1a1   : > { %3534 = vmatprep.subr.mxu1 %v4128_v35  ;;  %3567 = vmatprep.subr.mxu0 %v4128_v35 }
 0x1a2   : > { %3535 = vmatpush3.msra.mxu1 %v2710_v47  ;;  %3568 = vmatpush3.msra.mxu0 %v2727_v48  ;;  %v2746_v47 = vld [vmem:[%s5608_s3 + $0x280] sm:$0xff]  ;;  %v2777_v48 = vld [vmem:[%s5608_s3 + $0x378] sm:$0xff] }
 0x1a3   : > { %3536 = vmatprep.subr.mxu1 %v4128_v35  ;;  %3569 = vmatprep.subr.mxu0 %v4128_v35 }
 0x1a4   : > { %3537 = vmatpush3.msra.mxu1 %v2709_v49  ;;  %3570 = vmatpush3.msra.mxu0 %v2726_v50  ;;  %v1547_v49 = vrot.slane %v4616_v40, 5  ;;  %v2776_v50 = vld [vmem:[%s5608_s3 + $0x370] sm:$0xff] }
 0x1a5   : > { %3538 = vmatprep.subr.mxu1 %v4128_v35  ;;  %3571 = vmatprep.subr.mxu0 %v4128_v35 }
 0x1a6   : > { %3539 = vmatpush3.msra.mxu1 %v2708_v51  ;;  %3572 = vmatpush3.msra.mxu0 %v2725_v52  ;;  %v2793_v51 = vld [vmem:[%s5608_s3 + $0x3f8] sm:$0xff]  ;;  %v2775_v52 = vld [vmem:[%s5608_s3 + $0x368] sm:$0xff] }
 0x1a7   : > { %3540 = vmatprep.subr.mxu1 %v4128_v35  ;;  %3573 = vmatprep.subr.mxu0 %v4128_v35 }
 0x1a8   : > { %3541 = vmatpush3.msra.mxu1 %v2707_v53  ;;  %3574 = vmatpush3.msra.mxu0 %v2724_v54  ;;  %v2792_v53 = vld [vmem:[%s5608_s3 + $0x3f0] sm:$0xff]  ;;  %v2774_v54 = vld [vmem:[%s5608_s3 + $0x360] sm:$0xff] }
 0x1a9   : > { %3542 = vmatprep.subr.mxu1 %v4128_v35  ;;  %3575 = vmatprep.subr.mxu0 %v4128_v35 }
 0x1aa   : > { %3543 = vmatpush3.msra.mxu1 %v2706_v55  ;;  %3576 = vmatpush3.msra.mxu0 %v2723_v56  ;;  %v2791_v55 = vld [vmem:[%s5608_s3 + $0x3e8] sm:$0xff]  ;;  %v2773_v56 = vld [vmem:[%s5608_s3 + $0x358] sm:$0xff] }
 0x1ab   : > { %3544 = vmatprep.subr.mxu1 %v4128_v35  ;;  %3577 = vmatprep.subr.mxu0 %v4128_v35 }
 0x1ac   : > { %3545 = vmatpush3.msra.mxu1 %v2705_v57  ;;  %3578 = vmatpush3.msra.mxu0 %v2722_v58  ;;  %v2790_v57 = vld [vmem:[%s5608_s3 + $0x3e0] sm:$0xff]  ;;  %v2772_v58 = vld [vmem:[%s5608_s3 + $0x350] sm:$0xff] }
 0x1ad   : > { %3546 = vmatprep.subr.mxu1 %v4128_v35  ;;  %3579 = vmatprep.subr.mxu0 %v4128_v35 }
 0x1ae   : > { %3547 = vmatpush3.msra.mxu1 %v2704_v59  ;;  %3580 = vmatpush3.msra.mxu0 %v2721_v60  ;;  %v2789_v59 = vld [vmem:[%s5608_s3 + $0x3d8] sm:$0xff]  ;;  %v2771_v60 = vld [vmem:[%s5608_s3 + $0x348] sm:$0xff] }
 0x1af   : > { %3548 = vmatprep.subr.mxu1 %v4128_v35  ;;  %3581 = vmatprep.subr.mxu0 %v4128_v35 }
 0x1b0   : > { %3549 = vmatpush3.msra.mxu1 %v2703_v61  ;;  %3582 = vmatpush3.msra.mxu0 %v2720_v62  ;;  %v2788_v61 = vld [vmem:[%s5608_s3 + $0x3d0] sm:$0xff]  ;;  %v2770_v62 = vld [vmem:[%s5608_s3 + $0x340] sm:$0xff] }
 0x1b1   : > { %3550 = vmatprep.subr.mxu1 %v4128_v35  ;;  %3583 = vmatprep.subr.mxu0 %v4128_v35 }
 0x1b2   : > { %3551 = vmatpush3.msra.mxu1 %v2702_v63  ;;  %3584 = vmatpush3.msra.mxu0 %v2719_v0  ;;  %v2787_v63 = vld [vmem:[%s5608_s3 + $0x3c8] sm:$0xff]  ;;  %v2769_v0 = vld [vmem:[%s5608_s3 + $0x338] sm:$0xff] }
 0x1b3   : > { %3552 = vmatprep.subr.mxu1 %v4128_v35  ;;  %3585 = vmatprep.subr.mxu0 %v4128_v35 }
 0x1b4   : > { %3553 = vmatpush3.msra.mxu1 %v2701_v1  ;;  %3586 = vmatpush3.msra.mxu0 %v2718_v2  ;;  %v2786_v1 = vld [vmem:[%s5608_s3 + $0x3c0] sm:$0xff]  ;;  %v2768_v2 = vld [vmem:[%s5608_s3 + $0x330] sm:$0xff] }
 0x1b5   : > { %3554 = vmatprep.subr.mxu1 %v4128_v35  ;;  %3587 = vmatprep.subr.mxu0 %v4128_v35 }
 0x1b6   : > { %3555 = vmatpush3.msra.mxu1 %v2700_v3  ;;  %3588 = vmatpush3.msra.mxu0 %v2717_v4  ;;  %v2785_v3 = vld [vmem:[%s5608_s3 + $0x3b8] sm:$0xff]  ;;  %v2767_v4 = vld [vmem:[%s5608_s3 + $0x328] sm:$0xff] }
 0x1b7   : > { %3556 = vmatprep.subr.mxu1 %v4128_v35  ;;  %3589 = vmatprep.subr.mxu0 %v4128_v35 }
 0x1b8   : > { %3557 = vmatpush3.msra.mxu1 %v2699_v5  ;;  %3590 = vmatpush3.msra.mxu0 %v2716_v6  ;;  %v2784_v5 = vld [vmem:[%s5608_s3 + $0x3b0] sm:$0xff]  ;;  %v2766_v6 = vld [vmem:[%s5608_s3 + $0x320] sm:$0xff] }
 0x1b9   : > { %3558 = vmatprep.subr.mxu1 %v4128_v35  ;;  %3591 = vmatprep.subr.mxu0 %v4128_v35 }
 0x1ba   : > { %3559 = vmatpush3.msra.mxu1 %v2698_v7  ;;  %3592 = vmatpush3.msra.mxu0 %v2715_v8  ;;  %v2783_v7 = vld [vmem:[%s5608_s3 + $0x3a8] sm:$0xff]  ;;  %v2765_v8 = vld [vmem:[%s5608_s3 + $0x318] sm:$0xff] }
 0x1bb   : > { %3561 = vmatmul.mubr.f32.vlgmr.msra.gmra.mxu1 %v1277_v9  ;;  %3593 = vmatprep.subr.mxu0 %v4128_v35  ;;  %v2782_v9 = vld [vmem:[%s5608_s3 + $0x3a0] sm:$0xff] }
 0x1bc   : > { %3598 = vmatprep.subr.mxu1 %v4128_v35  ;;  %3594 = vmatpush3.msra.mxu0 %v2714_v10  ;;  %v2764_v10 = vld [vmem:[%s5608_s3 + $0x310] sm:$0xff] }
 0x1bd   : > { %3595 = vmatprep.mubr.msk.f32.mxu0 %vm4129_vm3, %v4128_v35  ;;  %3599 = vmatpush3.msra.mxu1 %v2745_v11  ;;  %v2781_v11 = vld [vmem:[%s5608_s3 + $0x398] sm:$0xff] }
 0x1be   : > { %3596 = vmatmul.mubr.f32.vlgmr.msra.gmra.mxu0 %v1367_v12  ;;  %3600 = vmatprep.subr.mxu1 %v4128_v35  ;;  %v2763_v12 = vld [vmem:[%s5608_s3 + $0x308] sm:$0xff] }
 0x1bf   : > { %3633 = vmatprep.subr.mxu0 %v4128_v35  ;;  %3601 = vmatpush3.msra.mxu1 %v2744_v13  ;;  %v2780_v13 = vld [vmem:[%s5608_s3 + $0x390] sm:$0xff] }
 0x1c0   : > { %3634 = vmatpush3.msra.mxu0 %v2761_v14  ;;  %3602 = vmatprep.subr.mxu1 %v4128_v35  ;;  %v2762_v14 = vld [vmem:[%s5608_s3 + $0x300] sm:$0xff] }
 0x1c1   : > { %3635 = vmatprep.subr.mxu0 %v4128_v35  ;;  %3603 = vmatpush3.msra.mxu1 %v2743_v15  ;;  %v2779_v15 = vld [vmem:[%s5608_s3 + $0x388] sm:$0xff] }
 0x1c2   : > { %3636 = vmatpush3.msra.mxu0 %v2760_v16  ;;  %3604 = vmatprep.subr.mxu1 %v4128_v35  ;;  %v1637_v16 = vrot.slane %v4616_v40, 6 }
 0x1c3   : > { %3637 = vmatprep.subr.mxu0 %v4128_v35  ;;  %3605 = vmatpush3.msra.mxu1 %v2742_v17  ;;  %v2778_v17 = vld [vmem:[%s5608_s3 + $0x380] sm:$0xff] }
 0x1c4   : > { %3638 = vmatpush3.msra.mxu0 %v2759_v18  ;;  %3606 = vmatprep.subr.mxu1 %v4128_v35  ;;  %v2809_v18 = vld [vmem:[%s5608_s3 + $0x478] sm:$0xff] }
 0x1c5   : > { %3639 = vmatprep.subr.mxu0 %v4128_v35  ;;  %3607 = vmatpush3.msra.mxu1 %v2741_v19  ;;  %v1727_v19 = vrot.slane %v4616_v40, 7  ;;  %v2824_v40 = vld [vmem:[%s5608_s3 + $0x4f0] sm:$0xff] }
 0x1c6   : > { %3640 = vmatpush3.msra.mxu0 %v2758_v20  ;;  %3608 = vmatprep.subr.mxu1 %v4128_v35  ;;  %v2808_v20 = vld [vmem:[%s5608_s3 + $0x470] sm:$0xff] }
 0x1c7   : > { %3641 = vmatprep.subr.mxu0 %v4128_v35  ;;  %3609 = vmatpush3.msra.mxu1 %v2740_v21  ;;  %v2825_v21 = vld [vmem:[%s5608_s3 + $0x4f8] sm:$0xff] }
 0x1c8   : > { %3642 = vmatpush3.msra.mxu0 %v2757_v22  ;;  %3610 = vmatprep.subr.mxu1 %v4128_v35  ;;  %v2807_v22 = vld [vmem:[%s5608_s3 + $0x468] sm:$0xff] }
 0x1c9   : > { %3643 = vmatprep.subr.mxu0 %v4128_v35  ;;  %3611 = vmatpush3.msra.mxu1 %v2739_v23  ;;  %v2806_v23 = vld [vmem:[%s5608_s3 + $0x460] sm:$0xff] }
 0x1ca   : > { %3644 = vmatpush3.msra.mxu0 %v2756_v24  ;;  %3612 = vmatprep.subr.mxu1 %v4128_v35  ;;  %v2823_v24 = vld [vmem:[%s5608_s3 + $0x4e8] sm:$0xff] }
 0x1cb   : > { %3645 = vmatprep.subr.mxu0 %v4128_v35  ;;  %3613 = vmatpush3.msra.mxu1 %v2738_v25  ;;  %v2805_v25 = vld [vmem:[%s5608_s3 + $0x458] sm:$0xff] }
 0x1cc   : > { %3646 = vmatpush3.msra.mxu0 %v2755_v26  ;;  %3614 = vmatprep.subr.mxu1 %v4128_v35  ;;  %v2822_v26 = vld [vmem:[%s5608_s3 + $0x4e0] sm:$0xff] }
 0x1cd   : > { %3647 = vmatprep.subr.mxu0 %v4128_v35  ;;  %3615 = vmatpush3.msra.mxu1 %v2737_v27  ;;  %v2804_v27 = vld [vmem:[%s5608_s3 + $0x450] sm:$0xff] }
 0x1ce   : > { %3648 = vmatpush3.msra.mxu0 %v2754_v28  ;;  %3616 = vmatprep.subr.mxu1 %v4128_v35  ;;  %v2821_v28 = vld [vmem:[%s5608_s3 + $0x4d8] sm:$0xff] }
 0x1cf   : > { %3649 = vmatprep.subr.mxu0 %v4128_v35  ;;  %3617 = vmatpush3.msra.mxu1 %v2736_v29  ;;  %v2803_v29 = vld [vmem:[%s5608_s3 + $0x448] sm:$0xff] }
 0x1d0   : > { %3650 = vmatpush3.msra.mxu0 %v2753_v30  ;;  %3618 = vmatprep.subr.mxu1 %v4128_v35  ;;  %v2820_v30 = vld [vmem:[%s5608_s3 + $0x4d0] sm:$0xff] }
 0x1d1   : > { %3651 = vmatprep.subr.mxu0 %v4128_v35  ;;  %3619 = vmatpush3.msra.mxu1 %v2735_v31  ;;  %v2802_v31 = vld [vmem:[%s5608_s3 + $0x440] sm:$0xff] }
 0x1d2   : > { %3652 = vmatpush3.msra.mxu0 %v2752_v32  ;;  %3620 = vmatprep.subr.mxu1 %v4128_v35  ;;  %v2819_v32 = vld [vmem:[%s5608_s3 + $0x4c8] sm:$0xff] }
 0x1d3   : > { %3653 = vmatprep.subr.mxu0 %v4128_v35  ;;  %3621 = vmatpush3.msra.mxu1 %v2734_v33  ;;  %v2801_v33 = vld [vmem:[%s5608_s3 + $0x438] sm:$0xff] }
 0x1d4   : > { %3654 = vmatpush3.msra.mxu0 %v2751_v34  ;;  %3622 = vmatprep.subr.mxu1 %v4128_v35  ;;  %v2818_v34 = vld [vmem:[%s5608_s3 + $0x4c0] sm:$0xff] }
 0x1d5   : > { %3655 = vmatprep.subr.mxu0 %v4128_v35  ;;  %3623 = vmatpush3.msra.mxu1 %v2733_v36  ;;  %v2800_v36 = vld [vmem:[%s5608_s3 + $0x430] sm:$0xff] }
 0x1d6   : > { %3656 = vmatpush3.msra.mxu0 %v2750_v38  ;;  %3624 = vmatprep.subr.mxu1 %v4128_v35  ;;  %v2817_v38 = vld [vmem:[%s5608_s3 + $0x4b8] sm:$0xff] }
 0x1d7   : > { %3657 = vmatprep.subr.mxu0 %v4128_v35  ;;  %3625 = vmatpush3.msra.mxu1 %v2732_v39  ;;  %v2799_v39 = vld [vmem:[%s5608_s3 + $0x428] sm:$0xff] }
 0x1d8   : > { %3658 = vmatpush3.msra.mxu0 %v2749_v41  ;;  %3626 = vmatprep.subr.mxu1 %v4128_v35  ;;  %v2816_v41 = vld [vmem:[%s5608_s3 + $0x4b0] sm:$0xff] }
 0x1d9   : > { %3659 = vmatprep.subr.mxu0 %v4128_v35  ;;  %3627 = vmatpush3.msra.mxu1 %v2731_v42  ;;  %v2798_v42 = vld [vmem:[%s5608_s3 + $0x420] sm:$0xff] }
 0x1da   : > { %3660 = vmatpush3.msra.mxu0 %v2748_v43  ;;  %3628 = vmatprep.subr.mxu1 %v4128_v35  ;;  %v2815_v43 = vld [vmem:[%s5608_s3 + $0x4a8] sm:$0xff] }
 0x1db   : > { %3661 = vmatprep.subr.mxu0 %v4128_v35  ;;  %3629 = vmatpush3.msra.mxu1 %v2730_v44  ;;  %v2797_v44 = vld [vmem:[%s5608_s3 + $0x418] sm:$0xff] }
 0x1dc   : > { %3630 = vmatprep.mubr.msk.f32.mxu1 %vm4129_vm3, %v4128_v35  ;;  %3662 = vmatpush3.msra.mxu0 %v2747_v45  ;;  %v2814_v45 = vld [vmem:[%s5608_s3 + $0x4a0] sm:$0xff] }
 0x1dd   : > { %3631 = vmatmul.mubr.f32.vlgmr.msra.gmra.mxu1 %v1457_v46  ;;  %3663 = vmatprep.subr.mxu0 %v4128_v35  ;;  %v2796_v46 = vld [vmem:[%s5608_s3 + $0x410] sm:$0xff] }
 0x1de   : > { %3668 = vmatprep.subr.mxu1 %v4128_v35  ;;  %3664 = vmatpush3.msra.mxu0 %v2746_v47  ;;  %v2813_v47 = vld [vmem:[%s5608_s3 + $0x498] sm:$0xff] }
 0x1df   : > { %3665 = vmatprep.mubr.msk.f32.mxu0 %vm4129_vm3, %v4128_v35  ;;  %3669 = vmatpush3.msra.mxu1 %v2777_v48  ;;  %v2795_v48 = vld [vmem:[%s5608_s3 + $0x408] sm:$0xff] }
 0x1e0   : > { %3666 = vmatmul.mubr.f32.vlgmr.msra.gmra.mxu0 %v1547_v49  ;;  %3670 = vmatprep.subr.mxu1 %v4128_v35  ;;  %v2812_v49 = vld [vmem:[%s5608_s3 + $0x490] sm:$0xff] }
 0x1e1   : > { %3703 = vmatprep.subr.mxu0 %v4128_v35  ;;  %3671 = vmatpush3.msra.mxu1 %v2776_v50  ;;  %v2794_v50 = vld [vmem:[%s5608_s3 + $0x400] sm:$0xff] }
 0x1e2   : > { %3704 = vmatpush3.msra.mxu0 %v2793_v51  ;;  %3672 = vmatprep.subr.mxu1 %v4128_v35  ;;  %v2811_v51 = vld [vmem:[%s5608_s3 + $0x488] sm:$0xff] }
 0x1e3   : > { %3705 = vmatprep.subr.mxu0 %v4128_v35  ;;  %3673 = vmatpush3.msra.mxu1 %v2775_v52  ;;  %v5143_v52 = vmax.f32 %v4614_v37, 0.0 }
 0x1e4   : > { %3706 = vmatpush3.msra.mxu0 %v2792_v53  ;;  %3674 = vmatprep.subr.mxu1 %v4128_v35  ;;  %v2810_v53 = vld [vmem:[%s5608_s3 + $0x480] sm:$0xff] }
 0x1e5   : > { %3707 = vmatprep.subr.mxu0 %v4128_v35  ;;  %3675 = vmatpush3.msra.mxu1 %v2774_v54  ;;  %v2841_v54 = vld [vmem:[%s5608_s3 + $0x578] sm:$0xff]  ;;  %v1906_v37 = vrot.slane %v5143_v52, 1 }
 0x1e6   : > { %3708 = vmatpush3.msra.mxu0 %v2791_v55  ;;  %3676 = vmatprep.subr.mxu1 %v4128_v35  ;;  %v2840_v55 = vld [vmem:[%s5608_s3 + $0x570] sm:$0xff] }
 0x1e7   : > { %3709 = vmatprep.subr.mxu0 %v4128_v35  ;;  %3677 = vmatpush3.msra.mxu1 %v2773_v56  ;;  %v2857_v56 = vld [vmem:[%s5608_s3 + $0x5f8] sm:$0xff] }
 0x1e8   : > { %3710 = vmatpush3.msra.mxu0 %v2790_v57  ;;  %3678 = vmatprep.subr.mxu1 %v4128_v35  ;;  %v2839_v57 = vld [vmem:[%s5608_s3 + $0x568] sm:$0xff] }
 0x1e9   : > { %3711 = vmatprep.subr.mxu0 %v4128_v35  ;;  %3679 = vmatpush3.msra.mxu1 %v2772_v58  ;;  %v2856_v58 = vld [vmem:[%s5608_s3 + $0x5f0] sm:$0xff] }
 0x1ea   : > { %3712 = vmatpush3.msra.mxu0 %v2789_v59  ;;  %3680 = vmatprep.subr.mxu1 %v4128_v35  ;;  %v2838_v59 = vld [vmem:[%s5608_s3 + $0x560] sm:$0xff] }
 0x1eb   : > { %3713 = vmatprep.subr.mxu0 %v4128_v35  ;;  %3681 = vmatpush3.msra.mxu1 %v2771_v60  ;;  %v2855_v60 = vld [vmem:[%s5608_s3 + $0x5e8] sm:$0xff] }
 0x1ec   : > { %3714 = vmatpush3.msra.mxu0 %v2788_v61  ;;  %3682 = vmatprep.subr.mxu1 %v4128_v35  ;;  %v2837_v61 = vld [vmem:[%s5608_s3 + $0x558] sm:$0xff] }
 0x1ed   : > { %3715 = vmatprep.subr.mxu0 %v4128_v35  ;;  %3683 = vmatpush3.msra.mxu1 %v2770_v62  ;;  %v2854_v62 = vld [vmem:[%s5608_s3 + $0x5e0] sm:$0xff] }
 0x1ee   : > { %3716 = vmatpush3.msra.mxu0 %v2787_v63  ;;  %3684 = vmatprep.subr.mxu1 %v4128_v35  ;;  %v2836_v63 = vld [vmem:[%s5608_s3 + $0x550] sm:$0xff] }
 0x1ef   : > { %3717 = vmatprep.subr.mxu0 %v4128_v35  ;;  %3685 = vmatpush3.msra.mxu1 %v2769_v0  ;;  %v2853_v0 = vld [vmem:[%s5608_s3 + $0x5d8] sm:$0xff] }
 0x1f0   : > { %3718 = vmatpush3.msra.mxu0 %v2786_v1  ;;  %3686 = vmatprep.subr.mxu1 %v4128_v35  ;;  %v2835_v1 = vld [vmem:[%s5608_s3 + $0x548] sm:$0xff] }
 0x1f1   : > { %3719 = vmatprep.subr.mxu0 %v4128_v35  ;;  %3687 = vmatpush3.msra.mxu1 %v2768_v2  ;;  %v2852_v2 = vld [vmem:[%s5608_s3 + $0x5d0] sm:$0xff] }
 0x1f2   : > { %3720 = vmatpush3.msra.mxu0 %v2785_v3  ;;  %3688 = vmatprep.subr.mxu1 %v4128_v35  ;;  %v2834_v3 = vld [vmem:[%s5608_s3 + $0x540] sm:$0xff] }
 0x1f3   : > { %3721 = vmatprep.subr.mxu0 %v4128_v35  ;;  %3689 = vmatpush3.msra.mxu1 %v2767_v4  ;;  %v2851_v4 = vld [vmem:[%s5608_s3 + $0x5c8] sm:$0xff] }
 0x1f4   : > { %3722 = vmatpush3.msra.mxu0 %v2784_v5  ;;  %3690 = vmatprep.subr.mxu1 %v4128_v35  ;;  %v2833_v5 = vld [vmem:[%s5608_s3 + $0x538] sm:$0xff] }
 0x1f5   : > { %3723 = vmatprep.subr.mxu0 %v4128_v35  ;;  %3691 = vmatpush3.msra.mxu1 %v2766_v6  ;;  %v2850_v6 = vld [vmem:[%s5608_s3 + $0x5c0] sm:$0xff] }
 0x1f6   : > { %3724 = vmatpush3.msra.mxu0 %v2783_v7  ;;  %3692 = vmatprep.subr.mxu1 %v4128_v35  ;;  %v2832_v7 = vld [vmem:[%s5608_s3 + $0x530] sm:$0xff] }
 0x1f7   : > { %3725 = vmatprep.subr.mxu0 %v4128_v35  ;;  %3693 = vmatpush3.msra.mxu1 %v2765_v8  ;;  %v2849_v8 = vld [vmem:[%s5608_s3 + $0x5b8] sm:$0xff] }
 0x1f8   : > { %3726 = vmatpush3.msra.mxu0 %v2782_v9  ;;  %3694 = vmatprep.subr.mxu1 %v4128_v35  ;;  %v2831_v9 = vld [vmem:[%s5608_s3 + $0x528] sm:$0xff] }
 0x1f9   : > { %3727 = vmatprep.subr.mxu0 %v4128_v35  ;;  %3695 = vmatpush3.msra.mxu1 %v2764_v10  ;;  %v2848_v10 = vld [vmem:[%s5608_s3 + $0x5b0] sm:$0xff] }
 0x1fa   : > { %3728 = vmatpush3.msra.mxu0 %v2781_v11  ;;  %3696 = vmatprep.subr.mxu1 %v4128_v35  ;;  %v2830_v11 = vld [vmem:[%s5608_s3 + $0x520] sm:$0xff] }
 0x1fb   : > { %3729 = vmatprep.subr.mxu0 %v4128_v35  ;;  %3697 = vmatpush3.msra.mxu1 %v2763_v12  ;;  %v2847_v12 = vld [vmem:[%s5608_s3 + $0x5a8] sm:$0xff] }
 0x1fc   : > { %3730 = vmatpush3.msra.mxu0 %v2780_v13  ;;  %3698 = vmatprep.subr.mxu1 %v4128_v35  ;;  %v2829_v13 = vld [vmem:[%s5608_s3 + $0x518] sm:$0xff] }
 0x1fd   : > { %3731 = vmatprep.subr.mxu0 %v4128_v35  ;;  %3699 = vmatpush3.msra.mxu1 %v2762_v14  ;;  %v2846_v14 = vld [vmem:[%s5608_s3 + $0x5a0] sm:$0xff] }
 0x1fe   : > { %3700 = vmatprep.mubr.msk.f32.mxu1 %vm4129_vm3, %v4128_v35  ;;  %3732 = vmatpush3.msra.mxu0 %v2779_v15  ;;  %v2828_v15 = vld [vmem:[%s5608_s3 + $0x510] sm:$0xff] }
 0x1ff   : > { %3701 = vmatmul.mubr.f32.vlgmr.msra.gmra.mxu1 %v1637_v16  ;;  %3733 = vmatprep.subr.mxu0 %v4128_v35  ;;  %v2845_v16 = vld [vmem:[%s5608_s3 + $0x598] sm:$0xff] }
 0x200   : > { %3738 = vmatprep.subr.mxu1 %v4128_v35  ;;  %3734 = vmatpush3.msra.mxu0 %v2778_v17  ;;  %v2827_v17 = vld [vmem:[%s5608_s3 + $0x508] sm:$0xff] }
 0x201   : > { %3735 = vmatprep.mubr.msk.f32.mxu0 %vm4129_vm3, %v4128_v35  ;;  %3739 = vmatpush3.msra.mxu1 %v2809_v18  ;;  %v2844_v18 = vld [vmem:[%s5608_s3 + $0x590] sm:$0xff] }
 0x202   : > { %3736 = vmatmul.mubr.f32.vlgmr.msra.gmra.mxu0 %v1727_v19  ;;  %3740 = vmatprep.subr.mxu1 %v4128_v35  ;;  %v2826_v19 = vld [vmem:[%s5608_s3 + $0x500] sm:$0xff] }
 0x203   : > { %3773 = vmatprep.subr.mxu0 %v4128_v35  ;;  %3741 = vmatpush3.msra.mxu1 %v2808_v20  ;;  %v2843_v20 = vld [vmem:[%s5608_s3 + $0x588] sm:$0xff] }
 0x204   : > { %3774 = vmatpush3.msra.mxu0 %v2825_v21  ;;  %3742 = vmatprep.subr.mxu1 %v4128_v35  ;;  %v1996_v21 = vrot.slane %v5143_v52, 2 }
 0x205   : > { %3775 = vmatprep.subr.mxu0 %v4128_v35  ;;  %3743 = vmatpush3.msra.mxu1 %v2807_v22  ;;  %v2842_v22 = vld [vmem:[%s5608_s3 + $0x580] sm:$0xff] }
 0x206   : > { %3776 = vmatpush3.msra.mxu0 %v2824_v40  ;;  %3744 = vmatprep.subr.mxu1 %v4128_v35  ;;  %v2873_v40 = vld [vmem:[%s5608_s3 + $0x678] sm:$0xff] }
 0x207   : > { %3777 = vmatprep.subr.mxu0 %v4128_v35  ;;  %3745 = vmatpush3.msra.mxu1 %v2806_v23  ;;  %v2086_v23 = vrot.slane %v5143_v52, 3 }
 0x208   : > { %3778 = vmatpush3.msra.mxu0 %v2823_v24  ;;  %3746 = vmatprep.subr.mxu1 %v4128_v35  ;;  %v2872_v24 = vld [vmem:[%s5608_s3 + $0x670] sm:$0xff] }
 0x209   : > { %3779 = vmatprep.subr.mxu0 %v4128_v35  ;;  %3747 = vmatpush3.msra.mxu1 %v2805_v25  ;;  %v2889_v25 = vld [vmem:[%s5608_s3 + $0x6f8] sm:$0xff] }
 0x20a   : > { %3780 = vmatpush3.msra.mxu0 %v2822_v26  ;;  %3748 = vmatprep.subr.mxu1 %v4128_v35  ;;  %v2871_v26 = vld [vmem:[%s5608_s3 + $0x668] sm:$0xff] }
 0x20b   : > { %3781 = vmatprep.subr.mxu0 %v4128_v35  ;;  %3749 = vmatpush3.msra.mxu1 %v2804_v27  ;;  %v2888_v27 = vld [vmem:[%s5608_s3 + $0x6f0] sm:$0xff] }
 0x20c   : > { %3782 = vmatpush3.msra.mxu0 %v2821_v28  ;;  %3750 = vmatprep.subr.mxu1 %v4128_v35  ;;  %v2870_v28 = vld [vmem:[%s5608_s3 + $0x660] sm:$0xff] }
 0x20d   : > { %3783 = vmatprep.subr.mxu0 %v4128_v35  ;;  %3751 = vmatpush3.msra.mxu1 %v2803_v29  ;;  %v2887_v29 = vld [vmem:[%s5608_s3 + $0x6e8] sm:$0xff] }
 0x20e   : > { %3784 = vmatpush3.msra.mxu0 %v2820_v30  ;;  %3752 = vmatprep.subr.mxu1 %v4128_v35  ;;  %v2869_v30 = vld [vmem:[%s5608_s3 + $0x658] sm:$0xff] }
 0x20f   : > { %3785 = vmatprep.subr.mxu0 %v4128_v35  ;;  %3753 = vmatpush3.msra.mxu1 %v2802_v31  ;;  %v2886_v31 = vld [vmem:[%s5608_s3 + $0x6e0] sm:$0xff] }
 0x210   : > { %3786 = vmatpush3.msra.mxu0 %v2819_v32  ;;  %3754 = vmatprep.subr.mxu1 %v4128_v35  ;;  %v2868_v32 = vld [vmem:[%s5608_s3 + $0x650] sm:$0xff] }
 0x211   : > { %3787 = vmatprep.subr.mxu0 %v4128_v35  ;;  %3755 = vmatpush3.msra.mxu1 %v2801_v33  ;;  %v2885_v33 = vld [vmem:[%s5608_s3 + $0x6d8] sm:$0xff] }
 0x212   : > { %3788 = vmatpush3.msra.mxu0 %v2818_v34  ;;  %3756 = vmatprep.subr.mxu1 %v4128_v35  ;;  %v2867_v34 = vld [vmem:[%s5608_s3 + $0x648] sm:$0xff] }
 0x213   : > { %3789 = vmatprep.subr.mxu0 %v4128_v35  ;;  %3757 = vmatpush3.msra.mxu1 %v2800_v36  ;;  %v2884_v36 = vld [vmem:[%s5608_s3 + $0x6d0] sm:$0xff] }
 0x214   : > { %3790 = vmatpush3.msra.mxu0 %v2817_v38  ;;  %3758 = vmatprep.subr.mxu1 %v4128_v35  ;;  %v2866_v38 = vld [vmem:[%s5608_s3 + $0x640] sm:$0xff] }
 0x215   : > { %3791 = vmatprep.subr.mxu0 %v4128_v35  ;;  %3759 = vmatpush3.msra.mxu1 %v2799_v39  ;;  %v2883_v39 = vld [vmem:[%s5608_s3 + $0x6c8] sm:$0xff] }
 0x216   : > { %3792 = vmatpush3.msra.mxu0 %v2816_v41  ;;  %3760 = vmatprep.subr.mxu1 %v4128_v35  ;;  %v2865_v41 = vld [vmem:[%s5608_s3 + $0x638] sm:$0xff] }
 0x217   : > { %3793 = vmatprep.subr.mxu0 %v4128_v35  ;;  %3761 = vmatpush3.msra.mxu1 %v2798_v42  ;;  %v2882_v42 = vld [vmem:[%s5608_s3 + $0x6c0] sm:$0xff] }
 0x218   : > { %3794 = vmatpush3.msra.mxu0 %v2815_v43  ;;  %3762 = vmatprep.subr.mxu1 %v4128_v35  ;;  %v2864_v43 = vld [vmem:[%s5608_s3 + $0x630] sm:$0xff] }
 0x219   : > { %3795 = vmatprep.subr.mxu0 %v4128_v35  ;;  %3763 = vmatpush3.msra.mxu1 %v2797_v44  ;;  %v2881_v44 = vld [vmem:[%s5608_s3 + $0x6b8] sm:$0xff] }
 0x21a   : > { %3796 = vmatpush3.msra.mxu0 %v2814_v45  ;;  %3764 = vmatprep.subr.mxu1 %v4128_v35  ;;  %v2863_v45 = vld [vmem:[%s5608_s3 + $0x628] sm:$0xff] }
 0x21b   : > { %3797 = vmatprep.subr.mxu0 %v4128_v35  ;;  %3765 = vmatpush3.msra.mxu1 %v2796_v46  ;;  %v2880_v46 = vld [vmem:[%s5608_s3 + $0x6b0] sm:$0xff] }
 0x21c   : > { %3798 = vmatpush3.msra.mxu0 %v2813_v47  ;;  %3766 = vmatprep.subr.mxu1 %v4128_v35  ;;  %v2862_v47 = vld [vmem:[%s5608_s3 + $0x620] sm:$0xff] }
 0x21d   : > { %3799 = vmatprep.subr.mxu0 %v4128_v35  ;;  %3767 = vmatpush3.msra.mxu1 %v2795_v48  ;;  %v2879_v48 = vld [vmem:[%s5608_s3 + $0x6a8] sm:$0xff] }
 0x21e   : > { %3800 = vmatpush3.msra.mxu0 %v2812_v49  ;;  %3768 = vmatprep.subr.mxu1 %v4128_v35  ;;  %v1081_v49 = vld [vmem:[%s5609_s4] sm:$0x1] }
 0x21f   : > { %3801 = vmatprep.subr.mxu0 %v4128_v35  ;;  %3769 = vmatpush3.msra.mxu1 %v2794_v50  ;;  %v2861_v50 = vld [vmem:[%s5608_s3 + $0x618] sm:$0xff] }
 0x220   : > { %3770 = vmatprep.mubr.msk.f32.mxu1 %vm4129_vm3, %v4128_v35  ;;  %3802 = vmatpush3.msra.mxu0 %v2811_v51  ;;  %v2878_v51 = vld [vmem:[%s5608_s3 + $0x6a0] sm:$0xff] }
 0x221   : > { %3771 = vmatmul.mubr.f32.vlgmr.msra.gmra.mxu1 %v5143_v52  ;;  %3803 = vmatprep.subr.mxu0 %v4128_v35 }
 0x222   : > { %3808 = vmatprep.subr.mxu1 %v4128_v35  ;;  %3804 = vmatpush3.msra.mxu0 %v2810_v53 }
 0x223   : > { %3805 = vmatprep.mubr.msk.f32.mxu0 %vm4129_vm3, %v4128_v35  ;;  %3809 = vmatpush3.msra.mxu1 %v2841_v54  ;;  %v2860_v54 = vld [vmem:[%s5608_s3 + $0x610] sm:$0xff] }
 0x224   : > { %3806 = vmatmul.mubr.f32.vlgmr.msra.gmra.mxu0 %v1906_v37  ;;  %3810 = vmatprep.subr.mxu1 %v4128_v35 }
 0x225   : > { %3843 = vmatprep.subr.mxu0 %v4128_v35  ;;  %3811 = vmatpush3.msra.mxu1 %v2840_v55  ;;  %v2877_v55 = vld [vmem:[%s5608_s3 + $0x698] sm:$0xff] }
 0x226   : > { %3844 = vmatpush3.msra.mxu0 %v2857_v56  ;;  %3812 = vmatprep.subr.mxu1 %v4128_v35 }
 0x227   : > { %3845 = vmatprep.subr.mxu0 %v4128_v35  ;;  %3813 = vmatpush3.msra.mxu1 %v2839_v57 }
 0x228   : > { %3846 = vmatpush3.msra.mxu0 %v2856_v58  ;;  %3814 = vmatprep.subr.mxu1 %v4128_v35  ;;  %v2859_v58 = vld [vmem:[%s5608_s3 + $0x608] sm:$0xff] }
 0x229   : > { %3847 = vmatprep.subr.mxu0 %v4128_v35  ;;  %3815 = vmatpush3.msra.mxu1 %v2838_v59 }
 0x22a   : > { %3848 = vmatpush3.msra.mxu0 %v2855_v60  ;;  %3816 = vmatprep.subr.mxu1 %v4128_v35  ;;  %v2876_v60 = vld [vmem:[%s5608_s3 + $0x690] sm:$0xff] }
 0x22b   : > { %3849 = vmatprep.subr.mxu0 %v4128_v35  ;;  %3817 = vmatpush3.msra.mxu1 %v2837_v61 }
 0x22c   : > { %3850 = vmatpush3.msra.mxu0 %v2854_v62  ;;  %3818 = vmatprep.subr.mxu1 %v4128_v35  ;;  %v2858_v62 = vld [vmem:[%s5608_s3 + $0x600] sm:$0xff] }
 0x22d   : > { %3851 = vmatprep.subr.mxu0 %v4128_v35  ;;  %3819 = vmatpush3.msra.mxu1 %v2836_v63  ;;  %v2875_v63 = vld [vmem:[%s5608_s3 + $0x688] sm:$0xff] }
 0x22e   : > { %3852 = vmatpush3.msra.mxu0 %v2853_v0  ;;  %3820 = vmatprep.subr.mxu1 %v4128_v35  ;;  %v2176_v0 = vrot.slane %v5143_v52, 4 }
 0x22f   : > { %3853 = vmatprep.subr.mxu0 %v4128_v35  ;;  %3821 = vmatpush3.msra.mxu1 %v2835_v1  ;;  %v2874_v1 = vld [vmem:[%s5608_s3 + $0x680] sm:$0xff] }
 0x230   : > { %3854 = vmatpush3.msra.mxu0 %v2852_v2  ;;  %3822 = vmatprep.subr.mxu1 %v4128_v35  ;;  %v2905_v2 = vld [vmem:[%s5608_s3 + $0x778] sm:$0xff] }
 0x231   : > { %3855 = vmatprep.subr.mxu0 %v4128_v35  ;;  %3823 = vmatpush3.msra.mxu1 %v2834_v3  ;;  %v2266_v3 = vrot.slane %v5143_v52, 5 }
 0x232   : > { %3856 = vmatpush3.msra.mxu0 %v2851_v4  ;;  %3824 = vmatprep.subr.mxu1 %v4128_v35  ;;  %v2904_v4 = vld [vmem:[%s5608_s3 + $0x770] sm:$0xff] }
 0x233   : > { %3857 = vmatprep.subr.mxu0 %v4128_v35  ;;  %3825 = vmatpush3.msra.mxu1 %v2833_v5  ;;  %v2921_v5 = vld [vmem:[%s5608_s3 + $0x7f8] sm:$0xff] }
 0x234   : > { %3858 = vmatpush3.msra.mxu0 %v2850_v6  ;;  %3826 = vmatprep.subr.mxu1 %v4128_v35  ;;  %v2903_v6 = vld [vmem:[%s5608_s3 + $0x768] sm:$0xff] }
 0x235   : > { %3859 = vmatprep.subr.mxu0 %v4128_v35  ;;  %3827 = vmatpush3.msra.mxu1 %v2832_v7  ;;  %v2920_v7 = vld [vmem:[%s5608_s3 + $0x7f0] sm:$0xff] }
 0x236   : > { %3860 = vmatpush3.msra.mxu0 %v2849_v8  ;;  %3828 = vmatprep.subr.mxu1 %v4128_v35  ;;  %v2902_v8 = vld [vmem:[%s5608_s3 + $0x760] sm:$0xff] }
 0x237   : > { %3861 = vmatprep.subr.mxu0 %v4128_v35  ;;  %3829 = vmatpush3.msra.mxu1 %v2831_v9  ;;  %v2919_v9 = vld [vmem:[%s5608_s3 + $0x7e8] sm:$0xff] }
 0x238   : > { %3862 = vmatpush3.msra.mxu0 %v2848_v10  ;;  %3830 = vmatprep.subr.mxu1 %v4128_v35  ;;  %v2901_v10 = vld [vmem:[%s5608_s3 + $0x758] sm:$0xff] }
 0x239   : > { %3863 = vmatprep.subr.mxu0 %v4128_v35  ;;  %3831 = vmatpush3.msra.mxu1 %v2830_v11  ;;  %v2918_v11 = vld [vmem:[%s5608_s3 + $0x7e0] sm:$0xff] }
 0x23a   : > { %3864 = vmatpush3.msra.mxu0 %v2847_v12  ;;  %3832 = vmatprep.subr.mxu1 %v4128_v35  ;;  %v2900_v12 = vld [vmem:[%s5608_s3 + $0x750] sm:$0xff] }
 0x23b   : > { %3865 = vmatprep.subr.mxu0 %v4128_v35  ;;  %3833 = vmatpush3.msra.mxu1 %v2829_v13  ;;  %v2917_v13 = vld [vmem:[%s5608_s3 + $0x7d8] sm:$0xff] }
 0x23c   : > { %3866 = vmatpush3.msra.mxu0 %v2846_v14  ;;  %3834 = vmatprep.subr.mxu1 %v4128_v35  ;;  %v2899_v14 = vld [vmem:[%s5608_s3 + $0x748] sm:$0xff] }
 0x23d   : > { %3867 = vmatprep.subr.mxu0 %v4128_v35  ;;  %3835 = vmatpush3.msra.mxu1 %v2828_v15  ;;  %v2916_v15 = vld [vmem:[%s5608_s3 + $0x7d0] sm:$0xff] }
 0x23e   : > { %3868 = vmatpush3.msra.mxu0 %v2845_v16  ;;  %3836 = vmatprep.subr.mxu1 %v4128_v35  ;;  %v2898_v16 = vld [vmem:[%s5608_s3 + $0x740] sm:$0xff] }
 0x23f   : > { %3869 = vmatprep.subr.mxu0 %v4128_v35  ;;  %3837 = vmatpush3.msra.mxu1 %v2827_v17  ;;  %v2915_v17 = vld [vmem:[%s5608_s3 + $0x7c8] sm:$0xff] }
 0x240   : > { %3870 = vmatpush3.msra.mxu0 %v2844_v18  ;;  %3838 = vmatprep.subr.mxu1 %v4128_v35  ;;  %v2897_v18 = vld [vmem:[%s5608_s3 + $0x738] sm:$0xff] }
 0x241   : > { %3871 = vmatprep.subr.mxu0 %v4128_v35  ;;  %3839 = vmatpush3.msra.mxu1 %v2826_v19  ;;  %v2914_v19 = vld [vmem:[%s5608_s3 + $0x7c0] sm:$0xff] }
 0x242   : > { %3840 = vmatprep.mubr.msk.f32.mxu1 %vm4129_vm3, %v4128_v35  ;;  %3872 = vmatpush3.msra.mxu0 %v2843_v20  ;;  %v2896_v20 = vld [vmem:[%s5608_s3 + $0x730] sm:$0xff] }
 0x243   : > { %3841 = vmatmul.mubr.f32.vlgmr.msra.gmra.mxu1 %v1996_v21  ;;  %3873 = vmatprep.subr.mxu0 %v4128_v35  ;;  %v2913_v21 = vld [vmem:[%s5608_s3 + $0x7b8] sm:$0xff] }
 0x244   : > { %3878 = vmatprep.subr.mxu1 %v4128_v35  ;;  %3874 = vmatpush3.msra.mxu0 %v2842_v22  ;;  %v2895_v22 = vld [vmem:[%s5608_s3 + $0x728] sm:$0xff] }
 0x245   : > { %3875 = vmatprep.mubr.msk.f32.mxu0 %vm4129_vm3, %v4128_v35  ;;  %3879 = vmatpush3.msra.mxu1 %v2873_v40  ;;  %v2912_v40 = vld [vmem:[%s5608_s3 + $0x7b0] sm:$0xff] }
 0x246   : > { %3876 = vmatmul.mubr.f32.vlgmr.msra.gmra.mxu0 %v2086_v23  ;;  %3880 = vmatprep.subr.mxu1 %v4128_v35  ;;  %v2894_v23 = vld [vmem:[%s5608_s3 + $0x720] sm:$0xff] }
 0x247   : > { %3913 = vmatprep.subr.mxu0 %v4128_v35  ;;  %3881 = vmatpush3.msra.mxu1 %v2872_v24  ;;  %v2911_v24 = vld [vmem:[%s5608_s3 + $0x7a8] sm:$0xff] }
 0x248   : > { %3914 = vmatpush3.msra.mxu0 %v2889_v25  ;;  %3882 = vmatprep.subr.mxu1 %v4128_v35 }
 0x249   : > { %3915 = vmatprep.subr.mxu0 %v4128_v35  ;;  %3883 = vmatpush3.msra.mxu1 %v2871_v26  ;;  %v2893_v26 = vld [vmem:[%s5608_s3 + $0x718] sm:$0xff] }
 0x24a   : > { %3916 = vmatpush3.msra.mxu0 %v2888_v27  ;;  %3884 = vmatprep.subr.mxu1 %v4128_v35 }
 0x24b   : > { %3917 = vmatprep.subr.mxu0 %v4128_v35  ;;  %3885 = vmatpush3.msra.mxu1 %v2870_v28  ;;  %v2910_v28 = vld [vmem:[%s5608_s3 + $0x7a0] sm:$0xff] }
 0x24c   : > { %3918 = vmatpush3.msra.mxu0 %v2887_v29  ;;  %3886 = vmatprep.subr.mxu1 %v4128_v35 }
 0x24d   : > { %3919 = vmatprep.subr.mxu0 %v4128_v35  ;;  %3887 = vmatpush3.msra.mxu1 %v2869_v30  ;;  %v2892_v30 = vld [vmem:[%s5608_s3 + $0x710] sm:$0xff] }
 0x24e   : > { %3920 = vmatpush3.msra.mxu0 %v2886_v31  ;;  %3888 = vmatprep.subr.mxu1 %v4128_v35 }
 0x24f   : > { %3921 = vmatprep.subr.mxu0 %v4128_v35  ;;  %3889 = vmatpush3.msra.mxu1 %v2868_v32  ;;  %v2909_v32 = vld [vmem:[%s5608_s3 + $0x798] sm:$0xff] }
 0x250   : > { %3922 = vmatpush3.msra.mxu0 %v2885_v33  ;;  %3890 = vmatprep.subr.mxu1 %v4128_v35 }
 0x251   : > { %3923 = vmatprep.subr.mxu0 %v4128_v35  ;;  %3891 = vmatpush3.msra.mxu1 %v2867_v34  ;;  %v2891_v34 = vld [vmem:[%s5608_s3 + $0x708] sm:$0xff] }
 0x252   : > { %3924 = vmatpush3.msra.mxu0 %v2884_v36  ;;  %3892 = vmatprep.subr.mxu1 %v4128_v35 }
 0x253   : > { %3925 = vmatprep.subr.mxu0 %v4128_v35  ;;  %3893 = vmatpush3.msra.mxu1 %v2866_v38  ;;  %v2908_v38 = vld [vmem:[%s5608_s3 + $0x790] sm:$0xff] }
 0x254   : > { %3926 = vmatpush3.msra.mxu0 %v2883_v39  ;;  %3894 = vmatprep.subr.mxu1 %v4128_v35  ;;  %v2890_v39 = vld [vmem:[%s5608_s3 + $0x700] sm:$0xff] }
 0x255   : > { %3927 = vmatprep.subr.mxu0 %v4128_v35  ;;  %3895 = vmatpush3.msra.mxu1 %v2865_v41  ;;  %v2907_v41 = vld [vmem:[%s5608_s3 + $0x788] sm:$0xff] }
 0x256   : > { %3928 = vmatpush3.msra.mxu0 %v2882_v42  ;;  %3896 = vmatprep.subr.mxu1 %v4128_v35  ;;  %v2356_v42 = vrot.slane %v5143_v52, 6 }
 0x257   : > { %3929 = vmatprep.subr.mxu0 %v4128_v35  ;;  %3897 = vmatpush3.msra.mxu1 %v2864_v43  ;;  %v2906_v43 = vld [vmem:[%s5608_s3 + $0x780] sm:$0xff] }
 0x258   : > { %3930 = vmatpush3.msra.mxu0 %v2881_v44  ;;  %3898 = vmatprep.subr.mxu1 %v4128_v35  ;;  %v2446_v44 = vrot.slane %v5143_v52, 7 }
 0x259   : > { %3931 = vmatprep.subr.mxu0 %v4128_v35  ;;  %3899 = vmatpush3.msra.mxu1 %v2863_v45 }
 0x25a   : > { %3932 = vmatpush3.msra.mxu0 %v2880_v46  ;;  %3900 = vmatprep.subr.mxu1 %v4128_v35 }
 0x25b   : > { %3933 = vmatprep.subr.mxu0 %v4128_v35  ;;  %3901 = vmatpush3.msra.mxu1 %v2862_v47  ;;  %v1164_v53 = vpop.f32.mrf.mxu1 }
 0x25c   : > { %3934 = vmatpush3.msra.mxu0 %v2879_v48  ;;  %3902 = vmatprep.subr.mxu1 %v4128_v35  ;;  %v1168_v37 = vadd.f32 %v1164_v53, %v1081_v49 }
 0x25d   : > { %3935 = vmatprep.subr.mxu0 %v4128_v35  ;;  %3903 = vmatpush3.msra.mxu1 %v2861_v50  ;;  %v3492_v56 = vpop.f32.mrf.mxu1  ;;  %v1255_v57 = vpop.f32.mrf.mxu0 }
 0x25e   : > { %3936 = vmatpush3.msra.mxu0 %v2878_v51  ;;  %3904 = vmatprep.subr.mxu1 %v4128_v35  ;;  %v5404_v59 = vadd.f32 %v1255_v57, %v1168_v37 }
 0x25f   : > { %3937 = vmatprep.subr.mxu0 %v4128_v35  ;;  %3905 = vmatpush3.msra.mxu1 %v2860_v54  ;;  %v3527_v61 = vpop.f32.mrf.mxu0 }
 0x260   : > { %3938 = vmatpush3.msra.mxu0 %v2877_v55  ;;  %3906 = vmatprep.subr.mxu1 %v4128_v35 }
 0x261   : > { %3939 = vmatprep.subr.mxu0 %v4128_v35  ;;  %3907 = vmatpush3.msra.mxu1 %v2859_v58 }
 0x262   : > { %3940 = vmatpush3.msra.mxu0 %v2876_v60  ;;  %3908 = vmatprep.subr.mxu1 %v4128_v35 }
 0x263   : > { %3941 = vmatprep.subr.mxu0 %v4128_v35  ;;  %3909 = vmatpush3.msra.mxu1 %v2858_v62 }
 0x264   : > { %3910 = vmatprep.mubr.msk.f32.mxu1 %vm4129_vm3, %v4128_v35  ;;  %3942 = vmatpush3.msra.mxu0 %v2875_v63 }
 0x265   : > { %3911 = vmatmul.mubr.f32.vlgmr.msra.gmra.mxu1 %v2176_v0  ;;  %3943 = vmatprep.subr.mxu0 %v4128_v35 }
 0x266   : > { %3948 = vmatprep.subr.mxu1 %v4128_v35  ;;  %3944 = vmatpush3.msra.mxu0 %v2874_v1 }
 0x267   : > { %3945 = vmatprep.mubr.msk.f32.mxu0 %vm4129_vm3, %v4128_v35  ;;  %3949 = vmatpush3.msra.mxu1 %v2905_v2 }
 0x268   : > { %3946 = vmatmul.mubr.f32.vlgmr.msra.gmra.mxu0 %v2266_v3  ;;  %3950 = vmatprep.subr.mxu1 %v4128_v35 }
 0x269   : > { %3983 = vmatprep.subr.mxu0 %v4128_v35  ;;  %3951 = vmatpush3.msra.mxu1 %v2904_v4 }
 0x26a   : > { %3984 = vmatpush3.msra.mxu0 %v2921_v5  ;;  %3952 = vmatprep.subr.mxu1 %v4128_v35 }
 0x26b   : > { %3985 = vmatprep.subr.mxu0 %v4128_v35  ;;  %3953 = vmatpush3.msra.mxu1 %v2903_v6 }
 0x26c   : > { %3986 = vmatpush3.msra.mxu0 %v2920_v7  ;;  %3954 = vmatprep.subr.mxu1 %v4128_v35 }
 0x26d   : > { %3987 = vmatprep.subr.mxu0 %v4128_v35  ;;  %3955 = vmatpush3.msra.mxu1 %v2902_v8 }
 0x26e   : > { %3988 = vmatpush3.msra.mxu0 %v2919_v9  ;;  %3956 = vmatprep.subr.mxu1 %v4128_v35 }
 0x26f   : > { %3989 = vmatprep.subr.mxu0 %v4128_v35  ;;  %3957 = vmatpush3.msra.mxu1 %v2901_v10 }
 0x270   : > { %3990 = vmatpush3.msra.mxu0 %v2918_v11  ;;  %3958 = vmatprep.subr.mxu1 %v4128_v35 }
 0x271   : > { %3991 = vmatprep.subr.mxu0 %v4128_v35  ;;  %3959 = vmatpush3.msra.mxu1 %v2900_v12 }
 0x272   : > { %3992 = vmatpush3.msra.mxu0 %v2917_v13  ;;  %3960 = vmatprep.subr.mxu1 %v4128_v35 }
 0x273   : > { %3993 = vmatprep.subr.mxu0 %v4128_v35  ;;  %3961 = vmatpush3.msra.mxu1 %v2899_v14 }
 0x274   : > { %3994 = vmatpush3.msra.mxu0 %v2916_v15  ;;  %3962 = vmatprep.subr.mxu1 %v4128_v35 }
 0x275   : > { %3995 = vmatprep.subr.mxu0 %v4128_v35  ;;  %3963 = vmatpush3.msra.mxu1 %v2898_v16 }
 0x276   : > { %3996 = vmatpush3.msra.mxu0 %v2915_v17  ;;  %3964 = vmatprep.subr.mxu1 %v4128_v35 }
 0x277   : > { %3997 = vmatprep.subr.mxu0 %v4128_v35  ;;  %3965 = vmatpush3.msra.mxu1 %v2897_v18 }
 0x278   : > { %3998 = vmatpush3.msra.mxu0 %v2914_v19  ;;  %3966 = vmatprep.subr.mxu1 %v4128_v35 }
 0x279   : > { %3999 = vmatprep.subr.mxu0 %v4128_v35  ;;  %3967 = vmatpush3.msra.mxu1 %v2896_v20 }
 0x27a   : > { %4000 = vmatpush3.msra.mxu0 %v2913_v21  ;;  %3968 = vmatprep.subr.mxu1 %v4128_v35 }
 0x27b   : > { %4001 = vmatprep.subr.mxu0 %v4128_v35  ;;  %3969 = vmatpush3.msra.mxu1 %v2895_v22  ;;  %v1345_v25 = vpop.f32.mrf.mxu1 }
 0x27c   : > { %4002 = vmatpush3.msra.mxu0 %v2912_v40  ;;  %3970 = vmatprep.subr.mxu1 %v4128_v35  ;;  %v1349_v27 = vadd.f32 %v1345_v25, %v5404_v59 }
 0x27d   : > { %4003 = vmatprep.subr.mxu0 %v4128_v35  ;;  %3971 = vmatpush3.msra.mxu1 %v2894_v23  ;;  %v3562_v29 = vpop.f32.mrf.mxu1 }
 0x27e   : > { %4004 = vmatpush3.msra.mxu0 %v2911_v24  ;;  %3972 = vmatprep.subr.mxu1 %v4128_v35  ;;  %v1435_v31 = vpop.f32.mrf.mxu0 }
 0x27f   : > { %4005 = vmatprep.subr.mxu0 %v4128_v35  ;;  %3973 = vmatpush3.msra.mxu1 %v2893_v26  ;;  %v1439_v33 = vadd.f32 %v1435_v31, %v1349_v27 }
 0x280   : > { %4006 = vmatpush3.msra.mxu0 %v2910_v28  ;;  %3974 = vmatprep.subr.mxu1 %v4128_v35  ;;  %v3597_v36 = vpop.f32.mrf.mxu0 }
 0x281   : > { %4007 = vmatprep.subr.mxu0 %v4128_v35  ;;  %3975 = vmatpush3.msra.mxu1 %v2892_v30 }
 0x282   : > { %4008 = vmatpush3.msra.mxu0 %v2909_v32  ;;  %3976 = vmatprep.subr.mxu1 %v4128_v35 }
 0x283   : > { %4009 = vmatprep.subr.mxu0 %v4128_v35  ;;  %3977 = vmatpush3.msra.mxu1 %v2891_v34 }
 0x284   : > { %4010 = vmatpush3.msra.mxu0 %v2908_v38  ;;  %3978 = vmatprep.subr.mxu1 %v4128_v35 }
 0x285   : > { %4011 = vmatprep.subr.mxu0 %v4128_v35  ;;  %3979 = vmatpush3.msra.mxu1 %v2890_v39 }
 0x286   : > { %3980 = vmatprep.mubr.msk.f32.mxu1 %vm4129_vm3, %v4128_v35  ;;  %4012 = vmatpush3.msra.mxu0 %v2907_v41 }
 0x287   : > { %3981 = vmatmul.mubr.f32.vlgmr.msra.gmra.mxu1 %v2356_v42  ;;  %4013 = vmatprep.subr.mxu0 %v4128_v35 }
 0x288   : > { %4014 = vmatpush3.msra.mxu0 %v2906_v43  ;;  %4015 = vmatprep.mubr.msk.f32.mxu0 %vm4129_vm3, %v4128_v35 }
 0x289   : > { %4016 = vmatmul.mubr.f32.vlgmr.msra.gmra.mxu0 %v2446_v44 }
 0x29d   : > { %v1525_v45 = vpop.f32.mrf.mxu1 }
 0x29e   : > { %v1529_v46 = vadd.f32 %v1525_v45, %v1439_v33 }
 0x29f   : > { %v3632_v47 = vpop.f32.mrf.mxu1 }
 0x2a0   : > { %v1615_v48 = vpop.f32.mrf.mxu0 }
 0x2a1   : > { %v1619_v49 = vadd.f32 %v1615_v48, %v1529_v46 }
 0x2a2   : > { %v3667_v50 = vpop.f32.mrf.mxu0 }
 0x2bf   : > { %v1705_v51 = vpop.f32.mrf.mxu1 }
 0x2c0   : > { %v1709_v53 = vadd.f32 %v1705_v51, %v1619_v49 }
 0x2c1   : > { %v3702_v54 = vpop.f32.mrf.mxu1 }
 0x2c2   : > { %v1795_v37 = vpop.f32.mrf.mxu0 }
 0x2c3   : > { %v1799_v55 = vadd.f32 %v1795_v37, %v1709_v53 }
 0x2c4   : > { %v3737_v56 = vpop.f32.mrf.mxu0 }
 0x2e1   : > { %v1883_v57 = vpop.f32.mrf.mxu1 }
 0x2e2   : > { %v1887_v58 = vadd.f32 %v1883_v57, %v1799_v55 }
 0x2e3   : > { %v3772_v52 = vpop.f32.mrf.mxu1 }
 0x2e4   : > { %v1974_v59 = vpop.f32.mrf.mxu0 }
 0x2e5   : > { %v1978_v60 = vadd.f32 %v1974_v59, %v1887_v58 }
 0x2e6   : > { %v3807_v61 = vpop.f32.mrf.mxu0 }
 0x303   : > { %v2064_v35 = vpop.f32.mrf.mxu1 }
 0x304   : > { %v2068_v5 = vadd.f32 %v2064_v35, %v1978_v60 }
 0x305   : > { %v3842_v62 = vpop.f32.mrf.mxu1 }
 0x306   : > { %v2154_v63 = vpop.f32.mrf.mxu0 }
 0x307   : > { %v2158_v6 = vadd.f32 %v2154_v63, %v2068_v5 }
 0x308   : > { %v3877_v0 = vpop.f32.mrf.mxu0 }
 0x325   : > { %v2244_v1 = vpop.f32.mrf.mxu1 }
 0x326   : > { %v2248_v7 = vadd.f32 %v2244_v1, %v2158_v6 }
 0x327   : > { %v3912_v2 = vpop.f32.mrf.mxu1 }
 0x328   : > { %v2334_v3 = vpop.f32.mrf.mxu0 }
 0x329   : > { %v2338_v8 = vadd.f32 %v2334_v3, %v2248_v7 }
 0x32a   : > { %v3947_v4 = vpop.f32.mrf.mxu0 }
 0x347   : > { %v2424_v9 = vpop.f32.mrf.mxu1 }
 0x348   : > { %v2428_v10 = vadd.f32 %v2424_v9, %v2338_v8 }
 0x349   : > { %v3982_v11 = vpop.f32.mrf.mxu1  ;;  %v2514_v12 = vpop.f32.mrf.mxu0 }
 0x34a   : > { %v2518_v13 = vadd.f32 %v2514_v12, %v2428_v10 }
 0x34b   : > { %v4017_v14 = vpop.f32.mrf.mxu0 }
 0x34c   : > { %v2521_v15 = vmul.f32 1.442695, %v2518_v13  ;;  %v2520_v16 = vadd.f32 1.0, %v2518_v13  ;;  %vm2519_vm5 = vcmp.gt.f32.partialorder %v2518_v13, 0.0 }
 0x34e   : > { %4062 = vpow2.f32 %v2521_v15 }
 0x35b   : > { %v4063_v17 = vpop.eup %4062 }
 0x35c   : > { %v2523_v18 = vsel %vm2519_vm5, %v2520_v16, %v4063_v17 }
 0x35d   : > { %2525 = vst.msk [vmem:[%s216_s26] sm:$0x1] %vm2524_vm4, %v2523_v18 }
 0x35e   : > { %4077 = shalt.err (!%p4074_p3)
}
 0x35f   : > { %s4078_s12 = scalar_lea.hbm %s5570_s8, 16  ;;  %s4082_s16 = scalar_lea.hbm %s5610_s5, 32 }
 0x360   : > { %p4079_p4 = scmp.ne.s32.totalorder %s5570_s8, %s4078_s12  ;;  %p4083_p9 = scmp.lt.s32.totalorder %s5570_s8, %s5610_s5 }
 0x361   : > { %p4084_p10 = scmp.lt.s32.totalorder %s4082_s16, %s4078_s12 }
 0x362   : > { %p4080_p7 = pnand %p4079_p4, %p4199_p5 }
 0x363   : > { %p4085_p11 = por %p4084_p10, %p4083_p9 }
 0x364   : > { %p4081_p8 = pneg %p4080_p7 }
 0x366   : > { %p4086_p12 = pnand %p4085_p11, %p4081_p8 }
 0x368   : > { %4089 = shalt.err (!%p4086_p12)
}
 0x369   : > { %4019 = dma.vmem_to_hbm [thread:$0]  (%p4199_p5), %s2540_s30, 16, %s5570_s8, %s2527_s14  }
 0x36a PF: > { %p4025_p13 = scmp.ge.s32.totalorder %s4124_s21, 2  ;;  %s2551_s25 = sand.u32 1, %s4112_s18  }
 0x36b   : > { %s2552_s26 = scalar_lea.sflag [#allocation3], %s2551_s25 }
 0x36c   : > { %p4022_p0 = pnand %p4025_p13, %p4203_p6 }
 0x36e   : > { %p4023_p1 = pneg %p4022_p0 }
 0x370   : > { %4107 = dma.done.wait (%p4023_p1), %s2552_s26, 16  }
 0x371   : > { %4109 = vsyncadd (%p4023_p1), %s2552_s26, 4294967280  ;;  %p15_p2 = scmp.ge.s32.totalorder %s4186_s24, 4   ;;  %s5613_s18 = smov %s4116_s19 }
 0x372   : > { %s5614_s19 = smov %s4120_s20  ;;  %s5615_s20 = smov %s4197_s27 }
 0x373   : > { %s5616_s21 = smov %s4186_s24  ;;  %17 = sbr.rel (!%p15_p2) target bundleno = 3 (0x3), region = 98 }
 0x378   :  { %2556 = vsyncpa [#allocation3], 1 }
 0x379   :  { %2558 = vsyncpa [#allocation3 + $0x1], 1 }

</bundles_post_ra>
